<compile_context>
chip_gen: v7x
topology: tpu7x:2x2x1
jax: 0.10.0
libtpu: 0.0.40
codegen_flags: <defaults>
</compile_context>

<pallas_src>
import jax
import jax.numpy as jnp
from jax import lax
from jax.experimental import pallas as pl
from jax.experimental.pallas import tpu as pltpu

# ---------------- configuration ------------------------------------------------
IN_CHANNELS = 4
FEAT = 16                       # feat_sizes = (16, 16)
LAYER_DILATIONS = (1, 2, 1, 2)  # block0: dil 1,2 ; block1: dil 1,2
BATCH = 2
TIME = 16
NROWS = BATCH * TIME            # 32 rows, row = b*T + t

# ---- packed weight-slab indices (bf16 (NWMATS, 16, 16)) -----------------------
W0 = 0
WLAYER0 = 1                                   # 7/layer: Wt_m,Wt_0,Wt_p,Ws_m,Ws_0,Ws_p,Wk
WIH0 = WLAYER0 + 7 * len(LAYER_DILATIONS)     # 29: f_r,f_z,f_n,b_r,b_z,b_n
WHH0 = WIH0 + 6                               # 35: f_r,f_z,f_n,b_r,b_z,b_n
WLINF = WHH0 + 6                              # 41
WLINB = WLINF + 1                             # 42
NWMATS = WLINB + 1                            # 43

# ---- packed bias-slab indices (f32 (NBMATS, 32, 16), pre-broadcast) ------------
B0 = 0
BLAYER0 = 1                                   # 3/layer: bt, bs, bk
BIH0 = BLAYER0 + 3 * len(LAYER_DILATIONS)     # 13
BHH0 = BIH0 + 6                               # 19
BLIN = BHH0 + 6                               # 25
NBMATS = BLIN + 1                             # 26


# ---------------- fused Pallas kernel -------------------------------------------

def fused_regressor_kernel(xt_ref, wm_ref, ws_ref, bm_ref, o_ref):
    """Whole Regressor forward on (B*T, C) rows; all operands VMEM resident.

    xt_ref: (32, 16) bf16  precomputed init-conv taps [x[t-1]|x[t]|x[t+1]|0]
    wm_ref: (43, 16, 16) bf16  all matmul weight matrices
    ws_ref: (2, 64, 32) bf16   per-dilation stacked [M(t-d); M(t+d)] 0/1 matrices
    bm_ref: (26, 32, 16) f32   biases pre-broadcast over the 32 rows
    o_ref : (32, 16) f32       head output (cols 0-1 meaningful)
    """
    f32 = jnp.float32
    bf16 = jnp.bfloat16
    C = FEAT
    N = TIME                # GRU "batch" size (batch_first=False quirk)
    S = BATCH               # GRU sequence length

    def mm(a, b):
        return jnp.dot(a, b, preferred_element_type=f32)

    # ---- init conv (BN folded) + SiLU --------------------------------------
    pre = mm(xt_ref[...], wm_ref[W0]) + bm_ref[B0]            # (32, C) f32
    h = pre * jax.nn.sigmoid(pre)

    # ---- 4 WaveNet layers; skip aliases the post-residual output -----------
    skip_sum = jnp.zeros((NROWS, C), f32)
    for l, d in enumerate(LAYER_DILATIONS):
        h_bf = h.astype(bf16)
        # one matmul makes both dilated taps, stacked on the sublane axis
        taps = mm(ws_ref[0 if d == 1 else 1], h_bf).astype(bf16)   # (64, C)
        tap_m = taps[0:NROWS]                                      # h[t-d]
        tap_p = taps[NROWS:2 * NROWS]                              # h[t+d]
        wb = WLAYER0 + 7 * l
        bb = BLAYER0 + 3 * l
        gt = (mm(tap_m, wm_ref[wb + 0]) + mm(h_bf, wm_ref[wb + 1]) +
              mm(tap_p, wm_ref[wb + 2]) + bm_ref[bb + 0])
        gs = (mm(tap_m, wm_ref[wb + 3]) + mm(h_bf, wm_ref[wb + 4]) +
              mm(tap_p, wm_ref[wb + 5]) + bm_ref[bb + 1])
        gated = jnp.tanh(gt) * jax.nn.sigmoid(gs)
        out = mm(gated.astype(bf16), wm_ref[wb + 6]) + bm_ref[bb + 2] + h
        skip_sum = skip_sum + out                                  # skip == out
        h = out

    # ---- bidirectional GRU (PyTorch gate order r,z,n; seq dim = B) ----------
    # Input projections for all steps / both directions hoisted out of the
    # recurrence, one small matmul per gate so every result is lane-aligned.
    sk_bf = skip_sum.astype(bf16)
    gi = [mm(sk_bf, wm_ref[WIH0 + g]) + bm_ref[BIH0 + g] for g in range(6)]

    def gru_cell(gir, giz, gin, hprev, gbase):
        hp = hprev.astype(bf16)
        ghr = mm(hp, wm_ref[WHH0 + gbase + 0]) + bm_ref[BHH0 + gbase + 0][0:N]
        ghz = mm(hp, wm_ref[WHH0 + gbase + 1]) + bm_ref[BHH0 + gbase + 1][0:N]
        ghn = mm(hp, wm_ref[WHH0 + gbase + 2]) + bm_ref[BHH0 + gbase + 2][0:N]
        r = jax.nn.sigmoid(gir + ghr)
        z = jax.nn.sigmoid(giz + ghz)
        n = jnp.tanh(gin + r * ghn)
        return (1.0 - z) * n + z * hprev

    h0 = jnp.zeros((N, C), f32)
    of = [None] * S
    hf = h0
    for s in range(S):                                 # fully unrolled (S == 2)
        rows = slice(s * N, (s + 1) * N)
        hf = gru_cell(gi[0][rows], gi[1][rows], gi[2][rows], hf, 0)
        of[s] = hf
    ob = [None] * S
    hb = h0
    for i in range(S):
        s = S - 1 - i
        rows = slice(s * N, (s + 1) * N)
        hb = gru_cell(gi[3][rows], gi[4][rows], gi[5][rows], hb, 3)
        ob[s] = hb

    # ---- head: SiLU -> Linear(2C -> 2, zero-padded to 16 lanes) -> sigmoid ---
    xf = jnp.concatenate(of, axis=0)                   # (32, C) sublane concat
    xb = jnp.concatenate(ob, axis=0)
    sf = (xf * jax.nn.sigmoid(xf)).astype(bf16)
    sb = (xb * jax.nn.sigmoid(xb)).astype(bf16)
    y = mm(sf, wm_ref[WLINF]) + mm(sb, wm_ref[WLINB]) + bm_ref[BLIN]
    o_ref[...] = jax.nn.sigmoid(y)                     # single (32,16) store


# ---------------- pallas_call glue ----------------------------------------------

def run_fused(x_taps, wmats, wshift, bmats):
    vmem = pl.BlockSpec(memory_space=pltpu.MemorySpace.VMEM)
    return pl.pallas_call(
        fused_regressor_kernel,
        out_shape=jax.ShapeDtypeStruct((NROWS, FEAT), jnp.float32),
        in_specs=[vmem, vmem, vmem, vmem],
        out_specs=vmem,
    )(x_taps, wmats, wshift, bmats)


# ---------------- parameters (PyTorch-layout) -----------------------------------

def make_params(seed=1):
    key = jax.random.PRNGKey(seed)

    def nrm(shape, scale=0.3):
        nonlocal key
        key, sub = jax.random.split(key)
        return scale * jax.random.normal(sub, shape, dtype=jnp.float32)

    C = FEAT
    params = {
        'conv0_w': nrm((C, IN_CHANNELS, 3)),
        'conv0_b': nrm((C,)),
        'bn0_gamma': 1.0 + nrm((C,), 0.1),
        'bn0_beta': nrm((C,), 0.1),
        'bn0_mean': nrm((C,), 0.1),
        'bn0_var': 1.0 + jnp.abs(nrm((C,), 0.1)),
        'layers': [],
        'gru_wih_f': nrm((3 * C, C)), 'gru_whh_f': nrm((3 * C, C)),
        'gru_bih_f': nrm((3 * C,)),   'gru_bhh_f': nrm((3 * C,)),
        'gru_wih_b': nrm((3 * C, C)), 'gru_whh_b': nrm((3 * C, C)),
        'gru_bih_b': nrm((3 * C,)),   'gru_bhh_b': nrm((3 * C,)),
        'lin_w': nrm((2, 2 * C)),
        'lin_b': nrm((2,)),
    }
    for _ in LAYER_DILATIONS:
        params['layers'].append({
            'wt': nrm((C, C, 3)), 'bt': nrm((C,)),
            'ws': nrm((C, C, 3)), 'bs': nrm((C,)),
            'wk': nrm((C, C, 1)), 'bk': nrm((C,)),
        })
    return params


def _shift_pair(d):
    """(64, 32) 0/1 matrix: rows 0-31 give h[t-d], rows 32-63 give h[t+d],
    with exact zero 'same' padding per 16-step sequence (no cross-seq leak)."""
    r = jnp.arange(NROWS)
    t = r % TIME
    rows = r[:, None]
    cols = r[None, :]
    m_minus = ((cols == rows - d) & (t[:, None] >= d)).astype(jnp.float32)
    m_plus = ((cols == rows + d) & (t[:, None] <= TIME - 1 - d)).astype(jnp.float32)
    return jnp.concatenate([m_minus, m_plus], axis=0)


def prepare_kernel_params(params):
    """One-time weight prep: BN folding, transposes, slab packing (bf16/f32)."""
    C = FEAT
    f32 = jnp.float32
    bf16 = jnp.bfloat16

    # eval-mode BatchNorm folded into the init conv (eps = 1e-5, exact).
    scale = params['bn0_gamma'] * lax.rsqrt(params['bn0_var'] + 1e-5)
    w0 = params['conv0_w'] * scale[:, None, None]                 # (C, Cin, 3)
    b0 = (params['conv0_b'] - params['bn0_mean']) * scale + params['bn0_beta']
    w0_rows = w0.transpose(2, 1, 0).reshape(3 * IN_CHANNELS, C)   # row = 4*k + cin
    W0m = jnp.zeros((C, C), f32).at[:3 * IN_CHANNELS, :].set(w0_rows)

    wmats = [W0m]
    bvecs = [b0]
    for lp in params['layers']:
        wt = lp['wt'].transpose(2, 1, 0)        # (3, Cin, Cout); k=0 <-> t-d
        ws = lp['ws'].transpose(2, 1, 0)
        wmats += [wt[0], wt[1], wt[2], ws[0], ws[1], ws[2], lp['wk'][:, :, 0].T]
        bvecs += [lp['bt'], lp['bs'], lp['bk']]
    for wih in (params['gru_wih_f'], params['gru_wih_b']):
        wmats += [wih[g * C:(g + 1) * C, :].T for g in range(3)]   # r, z, n
    for whh in (params['gru_whh_f'], params['gru_whh_b']):
        wmats += [whh[g * C:(g + 1) * C, :].T for g in range(3)]
    lin_w = params['lin_w']                                       # (2, 2C)
    wmats += [jnp.zeros((C, C), f32).at[:, :2].set(lin_w[:, :C].T),
              jnp.zeros((C, C), f32).at[:, :2].set(lin_w[:, C:].T)]

    for bih in (params['gru_bih_f'], params['gru_bih_b']):
        bvecs += [bih[g * C:(g + 1) * C] for g in range(3)]
    for bhh in (params['gru_bhh_f'], params['gru_bhh_b']):
        bvecs += [bhh[g * C:(g + 1) * C] for g in range(3)]
    bvecs += [jnp.zeros((C,), f32).at[:2].set(params['lin_b'])]

    wmats = jnp.stack(wmats).astype(bf16)                          # (43, C, C)
    bmats = jnp.stack([jnp.broadcast_to(b, (NROWS, C)) for b in bvecs]
                      ).astype(f32)                                # (26, 32, C)
    wshift = jnp.stack([_shift_pair(1), _shift_pair(2)]).astype(bf16)  # (2,64,32)

    assert wmats.shape[0] == NWMATS and bmats.shape[0] == NBMATS
    return {'wmats': wmats, 'wshift': wshift, 'bmats': bmats}


# ---------------- forward pass ---------------------------------------------------

@jax.jit
def regressor_forward(x, kp):
    B, Cin, T = x.shape
    # init-conv taps built here (fuses with the layout transpose in XLA):
    xm = jnp.pad(x[:, :, :-1], ((0, 0), (0, 0), (1, 0)))   # x[t-1], zero at t=0
    xp = jnp.pad(x[:, :, 1:], ((0, 0), (0, 0), (0, 1)))    # x[t+1], zero at t=T-1
    taps = jnp.concatenate([xm, x, xp], axis=1)            # (B, 3*Cin, T)
    taps = jnp.pad(taps, ((0, 0), (0, FEAT - 3 * Cin), (0, 0)))
    x_taps = taps.transpose(0, 2, 1).reshape(B * T, FEAT).astype(jnp.bfloat16)

    out = run_fused(x_taps, kp['wmats'], kp['wshift'], kp['bmats'])   # (B*T, 16)
    head = out[:, :2]
    return head.reshape(B, T, 2).transpose(0, 2, 1)        # (B, 2, T)


if __name__ == "__main__":
    key = jax.random.PRNGKey(0)
    x = jax.random.normal(key, (BATCH, IN_CHANNELS, TIME), dtype=jnp.float32)
    params = make_params(seed=1)
    kparams = prepare_kernel_params(params)
    out = regressor_forward(x, kparams)
    out = jax.block_until_ready(out)
    assert out.shape == (BATCH, 2, TIME), out.shape
    assert bool(jnp.all(jnp.isfinite(out)))
    print("KERNEL_OK")
</pallas_src>

<mosaic_0001>
module attributes {stable_mosaic.version = 11 : i64} {
  func.func @fused_regressor_kernel(%arg0: memref<32x16xbf16, #tpu.memory_space<vmem>>, %arg1: memref<43x16x16xbf16, #tpu.memory_space<vmem>>, %arg2: memref<2x64x32xbf16, #tpu.memory_space<vmem>>, %arg3: memref<26x32x16xf32, #tpu.memory_space<vmem>>, %arg4: memref<32x16xf32, #tpu.memory_space<vmem>>) attributes {dimension_semantics = [], scalar_prefetch = 0 : i64, scratch_operands = 0 : i64, tpu.core_type = #tpu.core_type<tc>} {
    %c0 = arith.constant 0 : index
    %c0_0 = arith.constant 0 : index
    %0 = vector.load %arg0[%c0, %c0_0] : memref<32x16xbf16, #tpu.memory_space<vmem>>, vector<32x16xbf16>
    %c0_1 = arith.constant 0 : index
    %c0_2 = arith.constant 0 : index
    %c0_3 = arith.constant 0 : index
    %1 = vector.load %arg1[%c0_1, %c0_2, %c0_3] : memref<43x16x16xbf16, #tpu.memory_space<vmem>>, vector<1x16x16xbf16>
    %2 = vector.shape_cast %1 : vector<1x16x16xbf16> to vector<16x16xbf16>
    %cst = arith.constant dense<0.000000e+00> : vector<32x16xf32>
    %3 = tpu.matmul %0, %2, %cst {dimension_numbers = #tpu.dot_dimension_numbers<[1], [0], [0], [1], [0, 0, 1, 1], [], []>} : vector<32x16xbf16>, vector<16x16xbf16>, vector<32x16xf32> -> vector<32x16xf32>
    %c0_4 = arith.constant 0 : index
    %c0_5 = arith.constant 0 : index
    %c0_6 = arith.constant 0 : index
    %4 = vector.load %arg3[%c0_4, %c0_5, %c0_6] : memref<26x32x16xf32, #tpu.memory_space<vmem>>, vector<1x32x16xf32>
    %5 = vector.shape_cast %4 : vector<1x32x16xf32> to vector<32x16xf32>
    %6 = arith.addf %3, %5 : vector<32x16xf32>
    %7 = arith.negf %6 : vector<32x16xf32>
    %8 = math.exp %7 : vector<32x16xf32>
    %cst_7 = arith.constant 1.000000e+00 : f32
    %9 = vector.broadcast %cst_7 : f32 to vector<32x16xf32>
    %10 = arith.addf %9, %8 : vector<32x16xf32>
    %11 = arith.divf %9, %10 : vector<32x16xf32>
    %12 = arith.mulf %6, %11 : vector<32x16xf32>
    %cst_8 = arith.constant 0.000000e+00 : f32
    %13 = vector.broadcast %cst_8 : f32 to vector<32x16xf32>
    %14 = arith.truncf %12 : vector<32x16xf32> to vector<32x16xbf16>
    %c0_9 = arith.constant 0 : index
    %c0_10 = arith.constant 0 : index
    %c0_11 = arith.constant 0 : index
    %15 = vector.load %arg2[%c0_9, %c0_10, %c0_11] : memref<2x64x32xbf16, #tpu.memory_space<vmem>>, vector<1x64x32xbf16>
    %16 = vector.shape_cast %15 : vector<1x64x32xbf16> to vector<64x32xbf16>
    %cst_12 = arith.constant dense<0.000000e+00> : vector<64x16xf32>
    %17 = tpu.matmul %16, %14, %cst_12 {dimension_numbers = #tpu.dot_dimension_numbers<[1], [0], [0], [1], [0, 0, 1, 1], [], []>} : vector<64x32xbf16>, vector<32x16xbf16>, vector<64x16xf32> -> vector<64x16xf32>
    %18 = arith.truncf %17 : vector<64x16xf32> to vector<64x16xbf16>
    %19 = vector.extract_strided_slice %18 {offsets = [0, 0], sizes = [32, 16], strides = [1, 1]} : vector<64x16xbf16> to vector<32x16xbf16>
    %20 = vector.extract_strided_slice %18 {offsets = [32, 0], sizes = [32, 16], strides = [1, 1]} : vector<64x16xbf16> to vector<32x16xbf16>
    %c1 = arith.constant 1 : index
    %c0_13 = arith.constant 0 : index
    %c0_14 = arith.constant 0 : index
    %21 = vector.load %arg1[%c1, %c0_13, %c0_14] : memref<43x16x16xbf16, #tpu.memory_space<vmem>>, vector<1x16x16xbf16>
    %22 = vector.shape_cast %21 : vector<1x16x16xbf16> to vector<16x16xbf16>
    %cst_15 = arith.constant dense<0.000000e+00> : vector<32x16xf32>
    %23 = tpu.matmul %19, %22, %cst_15 {dimension_numbers = #tpu.dot_dimension_numbers<[1], [0], [0], [1], [0, 0, 1, 1], [], []>} : vector<32x16xbf16>, vector<16x16xbf16>, vector<32x16xf32> -> vector<32x16xf32>
    %c2 = arith.constant 2 : index
    %c0_16 = arith.constant 0 : index
    %c0_17 = arith.constant 0 : index
    %24 = vector.load %arg1[%c2, %c0_16, %c0_17] : memref<43x16x16xbf16, #tpu.memory_space<vmem>>, vector<1x16x16xbf16>
    %25 = vector.shape_cast %24 : vector<1x16x16xbf16> to vector<16x16xbf16>
    %cst_18 = arith.constant dense<0.000000e+00> : vector<32x16xf32>
    %26 = tpu.matmul %14, %25, %cst_18 {dimension_numbers = #tpu.dot_dimension_numbers<[1], [0], [0], [1], [0, 0, 1, 1], [], []>} : vector<32x16xbf16>, vector<16x16xbf16>, vector<32x16xf32> -> vector<32x16xf32>
    %27 = arith.addf %23, %26 : vector<32x16xf32>
    %c3 = arith.constant 3 : index
    %c0_19 = arith.constant 0 : index
    %c0_20 = arith.constant 0 : index
    %28 = vector.load %arg1[%c3, %c0_19, %c0_20] : memref<43x16x16xbf16, #tpu.memory_space<vmem>>, vector<1x16x16xbf16>
    %29 = vector.shape_cast %28 : vector<1x16x16xbf16> to vector<16x16xbf16>
    %cst_21 = arith.constant dense<0.000000e+00> : vector<32x16xf32>
    %30 = tpu.matmul %20, %29, %cst_21 {dimension_numbers = #tpu.dot_dimension_numbers<[1], [0], [0], [1], [0, 0, 1, 1], [], []>} : vector<32x16xbf16>, vector<16x16xbf16>, vector<32x16xf32> -> vector<32x16xf32>
    %31 = arith.addf %27, %30 : vector<32x16xf32>
    %c1_22 = arith.constant 1 : index
    %c0_23 = arith.constant 0 : index
    %c0_24 = arith.constant 0 : index
    %32 = vector.load %arg3[%c1_22, %c0_23, %c0_24] : memref<26x32x16xf32, #tpu.memory_space<vmem>>, vector<1x32x16xf32>
    %33 = vector.shape_cast %32 : vector<1x32x16xf32> to vector<32x16xf32>
    %34 = arith.addf %31, %33 : vector<32x16xf32>
    %c4 = arith.constant 4 : index
    %c0_25 = arith.constant 0 : index
    %c0_26 = arith.constant 0 : index
    %35 = vector.load %arg1[%c4, %c0_25, %c0_26] : memref<43x16x16xbf16, #tpu.memory_space<vmem>>, vector<1x16x16xbf16>
    %36 = vector.shape_cast %35 : vector<1x16x16xbf16> to vector<16x16xbf16>
    %cst_27 = arith.constant dense<0.000000e+00> : vector<32x16xf32>
    %37 = tpu.matmul %19, %36, %cst_27 {dimension_numbers = #tpu.dot_dimension_numbers<[1], [0], [0], [1], [0, 0, 1, 1], [], []>} : vector<32x16xbf16>, vector<16x16xbf16>, vector<32x16xf32> -> vector<32x16xf32>
    %c5 = arith.constant 5 : index
    %c0_28 = arith.constant 0 : index
    %c0_29 = arith.constant 0 : index
    %38 = vector.load %arg1[%c5, %c0_28, %c0_29] : memref<43x16x16xbf16, #tpu.memory_space<vmem>>, vector<1x16x16xbf16>
    %39 = vector.shape_cast %38 : vector<1x16x16xbf16> to vector<16x16xbf16>
    %cst_30 = arith.constant dense<0.000000e+00> : vector<32x16xf32>
    %40 = tpu.matmul %14, %39, %cst_30 {dimension_numbers = #tpu.dot_dimension_numbers<[1], [0], [0], [1], [0, 0, 1, 1], [], []>} : vector<32x16xbf16>, vector<16x16xbf16>, vector<32x16xf32> -> vector<32x16xf32>
    %41 = arith.addf %37, %40 : vector<32x16xf32>
    %c6 = arith.constant 6 : index
    %c0_31 = arith.constant 0 : index
    %c0_32 = arith.constant 0 : index
    %42 = vector.load %arg1[%c6, %c0_31, %c0_32] : memref<43x16x16xbf16, #tpu.memory_space<vmem>>, vector<1x16x16xbf16>
    %43 = vector.shape_cast %42 : vector<1x16x16xbf16> to vector<16x16xbf16>
    %cst_33 = arith.constant dense<0.000000e+00> : vector<32x16xf32>
    %44 = tpu.matmul %20, %43, %cst_33 {dimension_numbers = #tpu.dot_dimension_numbers<[1], [0], [0], [1], [0, 0, 1, 1], [], []>} : vector<32x16xbf16>, vector<16x16xbf16>, vector<32x16xf32> -> vector<32x16xf32>
    %45 = arith.addf %41, %44 : vector<32x16xf32>
    %c2_34 = arith.constant 2 : index
    %c0_35 = arith.constant 0 : index
    %c0_36 = arith.constant 0 : index
    %46 = vector.load %arg3[%c2_34, %c0_35, %c0_36] : memref<26x32x16xf32, #tpu.memory_space<vmem>>, vector<1x32x16xf32>
    %47 = vector.shape_cast %46 : vector<1x32x16xf32> to vector<32x16xf32>
    %48 = arith.addf %45, %47 : vector<32x16xf32>
    %49 = math.tanh %34 : vector<32x16xf32>
    %50 = arith.negf %48 : vector<32x16xf32>
    %51 = math.exp %50 : vector<32x16xf32>
    %cst_37 = arith.constant 1.000000e+00 : f32
    %52 = vector.broadcast %cst_37 : f32 to vector<32x16xf32>
    %53 = arith.addf %52, %51 : vector<32x16xf32>
    %54 = arith.divf %52, %53 : vector<32x16xf32>
    %55 = arith.mulf %49, %54 : vector<32x16xf32>
    %56 = arith.truncf %55 : vector<32x16xf32> to vector<32x16xbf16>
    %c7 = arith.constant 7 : index
    %c0_38 = arith.constant 0 : index
    %c0_39 = arith.constant 0 : index
    %57 = vector.load %arg1[%c7, %c0_38, %c0_39] : memref<43x16x16xbf16, #tpu.memory_space<vmem>>, vector<1x16x16xbf16>
    %58 = vector.shape_cast %57 : vector<1x16x16xbf16> to vector<16x16xbf16>
    %cst_40 = arith.constant dense<0.000000e+00> : vector<32x16xf32>
    %59 = tpu.matmul %56, %58, %cst_40 {dimension_numbers = #tpu.dot_dimension_numbers<[1], [0], [0], [1], [0, 0, 1, 1], [], []>} : vector<32x16xbf16>, vector<16x16xbf16>, vector<32x16xf32> -> vector<32x16xf32>
    %c3_41 = arith.constant 3 : index
    %c0_42 = arith.constant 0 : index
    %c0_43 = arith.constant 0 : index
    %60 = vector.load %arg3[%c3_41, %c0_42, %c0_43] : memref<26x32x16xf32, #tpu.memory_space<vmem>>, vector<1x32x16xf32>
    %61 = vector.shape_cast %60 : vector<1x32x16xf32> to vector<32x16xf32>
    %62 = arith.addf %59, %61 : vector<32x16xf32>
    %63 = arith.addf %62, %12 : vector<32x16xf32>
    %64 = arith.addf %13, %63 : vector<32x16xf32>
    %65 = arith.truncf %63 : vector<32x16xf32> to vector<32x16xbf16>
    %c1_44 = arith.constant 1 : index
    %c0_45 = arith.constant 0 : index
    %c0_46 = arith.constant 0 : index
    %66 = vector.load %arg2[%c1_44, %c0_45, %c0_46] : memref<2x64x32xbf16, #tpu.memory_space<vmem>>, vector<1x64x32xbf16>
    %67 = vector.shape_cast %66 : vector<1x64x32xbf16> to vector<64x32xbf16>
    %cst_47 = arith.constant dense<0.000000e+00> : vector<64x16xf32>
    %68 = tpu.matmul %67, %65, %cst_47 {dimension_numbers = #tpu.dot_dimension_numbers<[1], [0], [0], [1], [0, 0, 1, 1], [], []>} : vector<64x32xbf16>, vector<32x16xbf16>, vector<64x16xf32> -> vector<64x16xf32>
    %69 = arith.truncf %68 : vector<64x16xf32> to vector<64x16xbf16>
    %70 = vector.extract_strided_slice %69 {offsets = [0, 0], sizes = [32, 16], strides = [1, 1]} : vector<64x16xbf16> to vector<32x16xbf16>
    %71 = vector.extract_strided_slice %69 {offsets = [32, 0], sizes = [32, 16], strides = [1, 1]} : vector<64x16xbf16> to vector<32x16xbf16>
    %c8 = arith.constant 8 : index
    %c0_48 = arith.constant 0 : index
    %c0_49 = arith.constant 0 : index
    %72 = vector.load %arg1[%c8, %c0_48, %c0_49] : memref<43x16x16xbf16, #tpu.memory_space<vmem>>, vector<1x16x16xbf16>
    %73 = vector.shape_cast %72 : vector<1x16x16xbf16> to vector<16x16xbf16>
    %cst_50 = arith.constant dense<0.000000e+00> : vector<32x16xf32>
    %74 = tpu.matmul %70, %73, %cst_50 {dimension_numbers = #tpu.dot_dimension_numbers<[1], [0], [0], [1], [0, 0, 1, 1], [], []>} : vector<32x16xbf16>, vector<16x16xbf16>, vector<32x16xf32> -> vector<32x16xf32>
    %c9 = arith.constant 9 : index
    %c0_51 = arith.constant 0 : index
    %c0_52 = arith.constant 0 : index
    %75 = vector.load %arg1[%c9, %c0_51, %c0_52] : memref<43x16x16xbf16, #tpu.memory_space<vmem>>, vector<1x16x16xbf16>
    %76 = vector.shape_cast %75 : vector<1x16x16xbf16> to vector<16x16xbf16>
    %cst_53 = arith.constant dense<0.000000e+00> : vector<32x16xf32>
    %77 = tpu.matmul %65, %76, %cst_53 {dimension_numbers = #tpu.dot_dimension_numbers<[1], [0], [0], [1], [0, 0, 1, 1], [], []>} : vector<32x16xbf16>, vector<16x16xbf16>, vector<32x16xf32> -> vector<32x16xf32>
    %78 = arith.addf %74, %77 : vector<32x16xf32>
    %c10 = arith.constant 10 : index
    %c0_54 = arith.constant 0 : index
    %c0_55 = arith.constant 0 : index
    %79 = vector.load %arg1[%c10, %c0_54, %c0_55] : memref<43x16x16xbf16, #tpu.memory_space<vmem>>, vector<1x16x16xbf16>
    %80 = vector.shape_cast %79 : vector<1x16x16xbf16> to vector<16x16xbf16>
    %cst_56 = arith.constant dense<0.000000e+00> : vector<32x16xf32>
    %81 = tpu.matmul %71, %80, %cst_56 {dimension_numbers = #tpu.dot_dimension_numbers<[1], [0], [0], [1], [0, 0, 1, 1], [], []>} : vector<32x16xbf16>, vector<16x16xbf16>, vector<32x16xf32> -> vector<32x16xf32>
    %82 = arith.addf %78, %81 : vector<32x16xf32>
    %c4_57 = arith.constant 4 : index
    %c0_58 = arith.constant 0 : index
    %c0_59 = arith.constant 0 : index
    %83 = vector.load %arg3[%c4_57, %c0_58, %c0_59] : memref<26x32x16xf32, #tpu.memory_space<vmem>>, vector<1x32x16xf32>
    %84 = vector.shape_cast %83 : vector<1x32x16xf32> to vector<32x16xf32>
    %85 = arith.addf %82, %84 : vector<32x16xf32>
    %c11 = arith.constant 11 : index
    %c0_60 = arith.constant 0 : index
    %c0_61 = arith.constant 0 : index
    %86 = vector.load %arg1[%c11, %c0_60, %c0_61] : memref<43x16x16xbf16, #tpu.memory_space<vmem>>, vector<1x16x16xbf16>
    %87 = vector.shape_cast %86 : vector<1x16x16xbf16> to vector<16x16xbf16>
    %cst_62 = arith.constant dense<0.000000e+00> : vector<32x16xf32>
    %88 = tpu.matmul %70, %87, %cst_62 {dimension_numbers = #tpu.dot_dimension_numbers<[1], [0], [0], [1], [0, 0, 1, 1], [], []>} : vector<32x16xbf16>, vector<16x16xbf16>, vector<32x16xf32> -> vector<32x16xf32>
    %c12 = arith.constant 12 : index
    %c0_63 = arith.constant 0 : index
    %c0_64 = arith.constant 0 : index
    %89 = vector.load %arg1[%c12, %c0_63, %c0_64] : memref<43x16x16xbf16, #tpu.memory_space<vmem>>, vector<1x16x16xbf16>
    %90 = vector.shape_cast %89 : vector<1x16x16xbf16> to vector<16x16xbf16>
    %cst_65 = arith.constant dense<0.000000e+00> : vector<32x16xf32>
    %91 = tpu.matmul %65, %90, %cst_65 {dimension_numbers = #tpu.dot_dimension_numbers<[1], [0], [0], [1], [0, 0, 1, 1], [], []>} : vector<32x16xbf16>, vector<16x16xbf16>, vector<32x16xf32> -> vector<32x16xf32>
    %92 = arith.addf %88, %91 : vector<32x16xf32>
    %c13 = arith.constant 13 : index
    %c0_66 = arith.constant 0 : index
    %c0_67 = arith.constant 0 : index
    %93 = vector.load %arg1[%c13, %c0_66, %c0_67] : memref<43x16x16xbf16, #tpu.memory_space<vmem>>, vector<1x16x16xbf16>
    %94 = vector.shape_cast %93 : vector<1x16x16xbf16> to vector<16x16xbf16>
    %cst_68 = arith.constant dense<0.000000e+00> : vector<32x16xf32>
    %95 = tpu.matmul %71, %94, %cst_68 {dimension_numbers = #tpu.dot_dimension_numbers<[1], [0], [0], [1], [0, 0, 1, 1], [], []>} : vector<32x16xbf16>, vector<16x16xbf16>, vector<32x16xf32> -> vector<32x16xf32>
    %96 = arith.addf %92, %95 : vector<32x16xf32>
    %c5_69 = arith.constant 5 : index
    %c0_70 = arith.constant 0 : index
    %c0_71 = arith.constant 0 : index
    %97 = vector.load %arg3[%c5_69, %c0_70, %c0_71] : memref<26x32x16xf32, #tpu.memory_space<vmem>>, vector<1x32x16xf32>
    %98 = vector.shape_cast %97 : vector<1x32x16xf32> to vector<32x16xf32>
    %99 = arith.addf %96, %98 : vector<32x16xf32>
    %100 = math.tanh %85 : vector<32x16xf32>
    %101 = arith.negf %99 : vector<32x16xf32>
    %102 = math.exp %101 : vector<32x16xf32>
    %cst_72 = arith.constant 1.000000e+00 : f32
    %103 = vector.broadcast %cst_72 : f32 to vector<32x16xf32>
    %104 = arith.addf %103, %102 : vector<32x16xf32>
    %105 = arith.divf %103, %104 : vector<32x16xf32>
    %106 = arith.mulf %100, %105 : vector<32x16xf32>
    %107 = arith.truncf %106 : vector<32x16xf32> to vector<32x16xbf16>
    %c14 = arith.constant 14 : index
    %c0_73 = arith.constant 0 : index
    %c0_74 = arith.constant 0 : index
    %108 = vector.load %arg1[%c14, %c0_73, %c0_74] : memref<43x16x16xbf16, #tpu.memory_space<vmem>>, vector<1x16x16xbf16>
    %109 = vector.shape_cast %108 : vector<1x16x16xbf16> to vector<16x16xbf16>
    %cst_75 = arith.constant dense<0.000000e+00> : vector<32x16xf32>
    %110 = tpu.matmul %107, %109, %cst_75 {dimension_numbers = #tpu.dot_dimension_numbers<[1], [0], [0], [1], [0, 0, 1, 1], [], []>} : vector<32x16xbf16>, vector<16x16xbf16>, vector<32x16xf32> -> vector<32x16xf32>
    %c6_76 = arith.constant 6 : index
    %c0_77 = arith.constant 0 : index
    %c0_78 = arith.constant 0 : index
    %111 = vector.load %arg3[%c6_76, %c0_77, %c0_78] : memref<26x32x16xf32, #tpu.memory_space<vmem>>, vector<1x32x16xf32>
    %112 = vector.shape_cast %111 : vector<1x32x16xf32> to vector<32x16xf32>
    %113 = arith.addf %110, %112 : vector<32x16xf32>
    %114 = arith.addf %113, %63 : vector<32x16xf32>
    %115 = arith.addf %64, %114 : vector<32x16xf32>
    %116 = arith.truncf %114 : vector<32x16xf32> to vector<32x16xbf16>
    %c0_79 = arith.constant 0 : index
    %c0_80 = arith.constant 0 : index
    %c0_81 = arith.constant 0 : index
    %117 = vector.load %arg2[%c0_79, %c0_80, %c0_81] : memref<2x64x32xbf16, #tpu.memory_space<vmem>>, vector<1x64x32xbf16>
    %118 = vector.shape_cast %117 : vector<1x64x32xbf16> to vector<64x32xbf16>
    %cst_82 = arith.constant dense<0.000000e+00> : vector<64x16xf32>
    %119 = tpu.matmul %118, %116, %cst_82 {dimension_numbers = #tpu.dot_dimension_numbers<[1], [0], [0], [1], [0, 0, 1, 1], [], []>} : vector<64x32xbf16>, vector<32x16xbf16>, vector<64x16xf32> -> vector<64x16xf32>
    %120 = arith.truncf %119 : vector<64x16xf32> to vector<64x16xbf16>
    %121 = vector.extract_strided_slice %120 {offsets = [0, 0], sizes = [32, 16], strides = [1, 1]} : vector<64x16xbf16> to vector<32x16xbf16>
    %122 = vector.extract_strided_slice %120 {offsets = [32, 0], sizes = [32, 16], strides = [1, 1]} : vector<64x16xbf16> to vector<32x16xbf16>
    %c15 = arith.constant 15 : index
    %c0_83 = arith.constant 0 : index
    %c0_84 = arith.constant 0 : index
    %123 = vector.load %arg1[%c15, %c0_83, %c0_84] : memref<43x16x16xbf16, #tpu.memory_space<vmem>>, vector<1x16x16xbf16>
    %124 = vector.shape_cast %123 : vector<1x16x16xbf16> to vector<16x16xbf16>
    %cst_85 = arith.constant dense<0.000000e+00> : vector<32x16xf32>
    %125 = tpu.matmul %121, %124, %cst_85 {dimension_numbers = #tpu.dot_dimension_numbers<[1], [0], [0], [1], [0, 0, 1, 1], [], []>} : vector<32x16xbf16>, vector<16x16xbf16>, vector<32x16xf32> -> vector<32x16xf32>
    %c16 = arith.constant 16 : index
    %c0_86 = arith.constant 0 : index
    %c0_87 = arith.constant 0 : index
    %126 = vector.load %arg1[%c16, %c0_86, %c0_87] : memref<43x16x16xbf16, #tpu.memory_space<vmem>>, vector<1x16x16xbf16>
    %127 = vector.shape_cast %126 : vector<1x16x16xbf16> to vector<16x16xbf16>
    %cst_88 = arith.constant dense<0.000000e+00> : vector<32x16xf32>
    %128 = tpu.matmul %116, %127, %cst_88 {dimension_numbers = #tpu.dot_dimension_numbers<[1], [0], [0], [1], [0, 0, 1, 1], [], []>} : vector<32x16xbf16>, vector<16x16xbf16>, vector<32x16xf32> -> vector<32x16xf32>
    %129 = arith.addf %125, %128 : vector<32x16xf32>
    %c17 = arith.constant 17 : index
    %c0_89 = arith.constant 0 : index
    %c0_90 = arith.constant 0 : index
    %130 = vector.load %arg1[%c17, %c0_89, %c0_90] : memref<43x16x16xbf16, #tpu.memory_space<vmem>>, vector<1x16x16xbf16>
    %131 = vector.shape_cast %130 : vector<1x16x16xbf16> to vector<16x16xbf16>
    %cst_91 = arith.constant dense<0.000000e+00> : vector<32x16xf32>
    %132 = tpu.matmul %122, %131, %cst_91 {dimension_numbers = #tpu.dot_dimension_numbers<[1], [0], [0], [1], [0, 0, 1, 1], [], []>} : vector<32x16xbf16>, vector<16x16xbf16>, vector<32x16xf32> -> vector<32x16xf32>
    %133 = arith.addf %129, %132 : vector<32x16xf32>
    %c7_92 = arith.constant 7 : index
    %c0_93 = arith.constant 0 : index
    %c0_94 = arith.constant 0 : index
    %134 = vector.load %arg3[%c7_92, %c0_93, %c0_94] : memref<26x32x16xf32, #tpu.memory_space<vmem>>, vector<1x32x16xf32>
    %135 = vector.shape_cast %134 : vector<1x32x16xf32> to vector<32x16xf32>
    %136 = arith.addf %133, %135 : vector<32x16xf32>
    %c18 = arith.constant 18 : index
    %c0_95 = arith.constant 0 : index
    %c0_96 = arith.constant 0 : index
    %137 = vector.load %arg1[%c18, %c0_95, %c0_96] : memref<43x16x16xbf16, #tpu.memory_space<vmem>>, vector<1x16x16xbf16>
    %138 = vector.shape_cast %137 : vector<1x16x16xbf16> to vector<16x16xbf16>
    %cst_97 = arith.constant dense<0.000000e+00> : vector<32x16xf32>
    %139 = tpu.matmul %121, %138, %cst_97 {dimension_numbers = #tpu.dot_dimension_numbers<[1], [0], [0], [1], [0, 0, 1, 1], [], []>} : vector<32x16xbf16>, vector<16x16xbf16>, vector<32x16xf32> -> vector<32x16xf32>
    %c19 = arith.constant 19 : index
    %c0_98 = arith.constant 0 : index
    %c0_99 = arith.constant 0 : index
    %140 = vector.load %arg1[%c19, %c0_98, %c0_99] : memref<43x16x16xbf16, #tpu.memory_space<vmem>>, vector<1x16x16xbf16>
    %141 = vector.shape_cast %140 : vector<1x16x16xbf16> to vector<16x16xbf16>
    %cst_100 = arith.constant dense<0.000000e+00> : vector<32x16xf32>
    %142 = tpu.matmul %116, %141, %cst_100 {dimension_numbers = #tpu.dot_dimension_numbers<[1], [0], [0], [1], [0, 0, 1, 1], [], []>} : vector<32x16xbf16>, vector<16x16xbf16>, vector<32x16xf32> -> vector<32x16xf32>
    %143 = arith.addf %139, %142 : vector<32x16xf32>
    %c20 = arith.constant 20 : index
    %c0_101 = arith.constant 0 : index
    %c0_102 = arith.constant 0 : index
    %144 = vector.load %arg1[%c20, %c0_101, %c0_102] : memref<43x16x16xbf16, #tpu.memory_space<vmem>>, vector<1x16x16xbf16>
    %145 = vector.shape_cast %144 : vector<1x16x16xbf16> to vector<16x16xbf16>
    %cst_103 = arith.constant dense<0.000000e+00> : vector<32x16xf32>
    %146 = tpu.matmul %122, %145, %cst_103 {dimension_numbers = #tpu.dot_dimension_numbers<[1], [0], [0], [1], [0, 0, 1, 1], [], []>} : vector<32x16xbf16>, vector<16x16xbf16>, vector<32x16xf32> -> vector<32x16xf32>
    %147 = arith.addf %143, %146 : vector<32x16xf32>
    %c8_104 = arith.constant 8 : index
    %c0_105 = arith.constant 0 : index
    %c0_106 = arith.constant 0 : index
    %148 = vector.load %arg3[%c8_104, %c0_105, %c0_106] : memref<26x32x16xf32, #tpu.memory_space<vmem>>, vector<1x32x16xf32>
    %149 = vector.shape_cast %148 : vector<1x32x16xf32> to vector<32x16xf32>
    %150 = arith.addf %147, %149 : vector<32x16xf32>
    %151 = math.tanh %136 : vector<32x16xf32>
    %152 = arith.negf %150 : vector<32x16xf32>
    %153 = math.exp %152 : vector<32x16xf32>
    %cst_107 = arith.constant 1.000000e+00 : f32
    %154 = vector.broadcast %cst_107 : f32 to vector<32x16xf32>
    %155 = arith.addf %154, %153 : vector<32x16xf32>
    %156 = arith.divf %154, %155 : vector<32x16xf32>
    %157 = arith.mulf %151, %156 : vector<32x16xf32>
    %158 = arith.truncf %157 : vector<32x16xf32> to vector<32x16xbf16>
    %c21 = arith.constant 21 : index
    %c0_108 = arith.constant 0 : index
    %c0_109 = arith.constant 0 : index
    %159 = vector.load %arg1[%c21, %c0_108, %c0_109] : memref<43x16x16xbf16, #tpu.memory_space<vmem>>, vector<1x16x16xbf16>
    %160 = vector.shape_cast %159 : vector<1x16x16xbf16> to vector<16x16xbf16>
    %cst_110 = arith.constant dense<0.000000e+00> : vector<32x16xf32>
    %161 = tpu.matmul %158, %160, %cst_110 {dimension_numbers = #tpu.dot_dimension_numbers<[1], [0], [0], [1], [0, 0, 1, 1], [], []>} : vector<32x16xbf16>, vector<16x16xbf16>, vector<32x16xf32> -> vector<32x16xf32>
    %c9_111 = arith.constant 9 : index
    %c0_112 = arith.constant 0 : index
    %c0_113 = arith.constant 0 : index
    %162 = vector.load %arg3[%c9_111, %c0_112, %c0_113] : memref<26x32x16xf32, #tpu.memory_space<vmem>>, vector<1x32x16xf32>
    %163 = vector.shape_cast %162 : vector<1x32x16xf32> to vector<32x16xf32>
    %164 = arith.addf %161, %163 : vector<32x16xf32>
    %165 = arith.addf %164, %114 : vector<32x16xf32>
    %166 = arith.addf %115, %165 : vector<32x16xf32>
    %167 = arith.truncf %165 : vector<32x16xf32> to vector<32x16xbf16>
    %c1_114 = arith.constant 1 : index
    %c0_115 = arith.constant 0 : index
    %c0_116 = arith.constant 0 : index
    %168 = vector.load %arg2[%c1_114, %c0_115, %c0_116] : memref<2x64x32xbf16, #tpu.memory_space<vmem>>, vector<1x64x32xbf16>
    %169 = vector.shape_cast %168 : vector<1x64x32xbf16> to vector<64x32xbf16>
    %cst_117 = arith.constant dense<0.000000e+00> : vector<64x16xf32>
    %170 = tpu.matmul %169, %167, %cst_117 {dimension_numbers = #tpu.dot_dimension_numbers<[1], [0], [0], [1], [0, 0, 1, 1], [], []>} : vector<64x32xbf16>, vector<32x16xbf16>, vector<64x16xf32> -> vector<64x16xf32>
    %171 = arith.truncf %170 : vector<64x16xf32> to vector<64x16xbf16>
    %172 = vector.extract_strided_slice %171 {offsets = [0, 0], sizes = [32, 16], strides = [1, 1]} : vector<64x16xbf16> to vector<32x16xbf16>
    %173 = vector.extract_strided_slice %171 {offsets = [32, 0], sizes = [32, 16], strides = [1, 1]} : vector<64x16xbf16> to vector<32x16xbf16>
    %c22 = arith.constant 22 : index
    %c0_118 = arith.constant 0 : index
    %c0_119 = arith.constant 0 : index
    %174 = vector.load %arg1[%c22, %c0_118, %c0_119] : memref<43x16x16xbf16, #tpu.memory_space<vmem>>, vector<1x16x16xbf16>
    %175 = vector.shape_cast %174 : vector<1x16x16xbf16> to vector<16x16xbf16>
    %cst_120 = arith.constant dense<0.000000e+00> : vector<32x16xf32>
    %176 = tpu.matmul %172, %175, %cst_120 {dimension_numbers = #tpu.dot_dimension_numbers<[1], [0], [0], [1], [0, 0, 1, 1], [], []>} : vector<32x16xbf16>, vector<16x16xbf16>, vector<32x16xf32> -> vector<32x16xf32>
    %c23 = arith.constant 23 : index
    %c0_121 = arith.constant 0 : index
    %c0_122 = arith.constant 0 : index
    %177 = vector.load %arg1[%c23, %c0_121, %c0_122] : memref<43x16x16xbf16, #tpu.memory_space<vmem>>, vector<1x16x16xbf16>
    %178 = vector.shape_cast %177 : vector<1x16x16xbf16> to vector<16x16xbf16>
    %cst_123 = arith.constant dense<0.000000e+00> : vector<32x16xf32>
    %179 = tpu.matmul %167, %178, %cst_123 {dimension_numbers = #tpu.dot_dimension_numbers<[1], [0], [0], [1], [0, 0, 1, 1], [], []>} : vector<32x16xbf16>, vector<16x16xbf16>, vector<32x16xf32> -> vector<32x16xf32>
    %180 = arith.addf %176, %179 : vector<32x16xf32>
    %c24 = arith.constant 24 : index
    %c0_124 = arith.constant 0 : index
    %c0_125 = arith.constant 0 : index
    %181 = vector.load %arg1[%c24, %c0_124, %c0_125] : memref<43x16x16xbf16, #tpu.memory_space<vmem>>, vector<1x16x16xbf16>
    %182 = vector.shape_cast %181 : vector<1x16x16xbf16> to vector<16x16xbf16>
    %cst_126 = arith.constant dense<0.000000e+00> : vector<32x16xf32>
    %183 = tpu.matmul %173, %182, %cst_126 {dimension_numbers = #tpu.dot_dimension_numbers<[1], [0], [0], [1], [0, 0, 1, 1], [], []>} : vector<32x16xbf16>, vector<16x16xbf16>, vector<32x16xf32> -> vector<32x16xf32>
    %184 = arith.addf %180, %183 : vector<32x16xf32>
    %c10_127 = arith.constant 10 : index
    %c0_128 = arith.constant 0 : index
    %c0_129 = arith.constant 0 : index
    %185 = vector.load %arg3[%c10_127, %c0_128, %c0_129] : memref<26x32x16xf32, #tpu.memory_space<vmem>>, vector<1x32x16xf32>
    %186 = vector.shape_cast %185 : vector<1x32x16xf32> to vector<32x16xf32>
    %187 = arith.addf %184, %186 : vector<32x16xf32>
    %c25 = arith.constant 25 : index
    %c0_130 = arith.constant 0 : index
    %c0_131 = arith.constant 0 : index
    %188 = vector.load %arg1[%c25, %c0_130, %c0_131] : memref<43x16x16xbf16, #tpu.memory_space<vmem>>, vector<1x16x16xbf16>
    %189 = vector.shape_cast %188 : vector<1x16x16xbf16> to vector<16x16xbf16>
    %cst_132 = arith.constant dense<0.000000e+00> : vector<32x16xf32>
    %190 = tpu.matmul %172, %189, %cst_132 {dimension_numbers = #tpu.dot_dimension_numbers<[1], [0], [0], [1], [0, 0, 1, 1], [], []>} : vector<32x16xbf16>, vector<16x16xbf16>, vector<32x16xf32> -> vector<32x16xf32>
    %c26 = arith.constant 26 : index
    %c0_133 = arith.constant 0 : index
    %c0_134 = arith.constant 0 : index
    %191 = vector.load %arg1[%c26, %c0_133, %c0_134] : memref<43x16x16xbf16, #tpu.memory_space<vmem>>, vector<1x16x16xbf16>
    %192 = vector.shape_cast %191 : vector<1x16x16xbf16> to vector<16x16xbf16>
    %cst_135 = arith.constant dense<0.000000e+00> : vector<32x16xf32>
    %193 = tpu.matmul %167, %192, %cst_135 {dimension_numbers = #tpu.dot_dimension_numbers<[1], [0], [0], [1], [0, 0, 1, 1], [], []>} : vector<32x16xbf16>, vector<16x16xbf16>, vector<32x16xf32> -> vector<32x16xf32>
    %194 = arith.addf %190, %193 : vector<32x16xf32>
    %c27 = arith.constant 27 : index
    %c0_136 = arith.constant 0 : index
    %c0_137 = arith.constant 0 : index
    %195 = vector.load %arg1[%c27, %c0_136, %c0_137] : memref<43x16x16xbf16, #tpu.memory_space<vmem>>, vector<1x16x16xbf16>
    %196 = vector.shape_cast %195 : vector<1x16x16xbf16> to vector<16x16xbf16>
    %cst_138 = arith.constant dense<0.000000e+00> : vector<32x16xf32>
    %197 = tpu.matmul %173, %196, %cst_138 {dimension_numbers = #tpu.dot_dimension_numbers<[1], [0], [0], [1], [0, 0, 1, 1], [], []>} : vector<32x16xbf16>, vector<16x16xbf16>, vector<32x16xf32> -> vector<32x16xf32>
    %198 = arith.addf %194, %197 : vector<32x16xf32>
    %c11_139 = arith.constant 11 : index
    %c0_140 = arith.constant 0 : index
    %c0_141 = arith.constant 0 : index
    %199 = vector.load %arg3[%c11_139, %c0_140, %c0_141] : memref<26x32x16xf32, #tpu.memory_space<vmem>>, vector<1x32x16xf32>
    %200 = vector.shape_cast %199 : vector<1x32x16xf32> to vector<32x16xf32>
    %201 = arith.addf %198, %200 : vector<32x16xf32>
    %202 = math.tanh %187 : vector<32x16xf32>
    %203 = arith.negf %201 : vector<32x16xf32>
    %204 = math.exp %203 : vector<32x16xf32>
    %cst_142 = arith.constant 1.000000e+00 : f32
    %205 = vector.broadcast %cst_142 : f32 to vector<32x16xf32>
    %206 = arith.addf %205, %204 : vector<32x16xf32>
    %207 = arith.divf %205, %206 : vector<32x16xf32>
    %208 = arith.mulf %202, %207 : vector<32x16xf32>
    %209 = arith.truncf %208 : vector<32x16xf32> to vector<32x16xbf16>
    %c28 = arith.constant 28 : index
    %c0_143 = arith.constant 0 : index
    %c0_144 = arith.constant 0 : index
    %210 = vector.load %arg1[%c28, %c0_143, %c0_144] : memref<43x16x16xbf16, #tpu.memory_space<vmem>>, vector<1x16x16xbf16>
    %211 = vector.shape_cast %210 : vector<1x16x16xbf16> to vector<16x16xbf16>
    %cst_145 = arith.constant dense<0.000000e+00> : vector<32x16xf32>
    %212 = tpu.matmul %209, %211, %cst_145 {dimension_numbers = #tpu.dot_dimension_numbers<[1], [0], [0], [1], [0, 0, 1, 1], [], []>} : vector<32x16xbf16>, vector<16x16xbf16>, vector<32x16xf32> -> vector<32x16xf32>
    %c12_146 = arith.constant 12 : index
    %c0_147 = arith.constant 0 : index
    %c0_148 = arith.constant 0 : index
    %213 = vector.load %arg3[%c12_146, %c0_147, %c0_148] : memref<26x32x16xf32, #tpu.memory_space<vmem>>, vector<1x32x16xf32>
    %214 = vector.shape_cast %213 : vector<1x32x16xf32> to vector<32x16xf32>
    %215 = arith.addf %212, %214 : vector<32x16xf32>
    %216 = arith.addf %215, %165 : vector<32x16xf32>
    %217 = arith.addf %166, %216 : vector<32x16xf32>
    %218 = arith.truncf %217 : vector<32x16xf32> to vector<32x16xbf16>
    %c29 = arith.constant 29 : index
    %c0_149 = arith.constant 0 : index
    %c0_150 = arith.constant 0 : index
    %219 = vector.load %arg1[%c29, %c0_149, %c0_150] : memref<43x16x16xbf16, #tpu.memory_space<vmem>>, vector<1x16x16xbf16>
    %220 = vector.shape_cast %219 : vector<1x16x16xbf16> to vector<16x16xbf16>
    %cst_151 = arith.constant dense<0.000000e+00> : vector<32x16xf32>
    %221 = tpu.matmul %218, %220, %cst_151 {dimension_numbers = #tpu.dot_dimension_numbers<[1], [0], [0], [1], [0, 0, 1, 1], [], []>} : vector<32x16xbf16>, vector<16x16xbf16>, vector<32x16xf32> -> vector<32x16xf32>
    %c13_152 = arith.constant 13 : index
    %c0_153 = arith.constant 0 : index
    %c0_154 = arith.constant 0 : index
    %222 = vector.load %arg3[%c13_152, %c0_153, %c0_154] : memref<26x32x16xf32, #tpu.memory_space<vmem>>, vector<1x32x16xf32>
    %223 = vector.shape_cast %222 : vector<1x32x16xf32> to vector<32x16xf32>
    %224 = arith.addf %221, %223 : vector<32x16xf32>
    %c30 = arith.constant 30 : index
    %c0_155 = arith.constant 0 : index
    %c0_156 = arith.constant 0 : index
    %225 = vector.load %arg1[%c30, %c0_155, %c0_156] : memref<43x16x16xbf16, #tpu.memory_space<vmem>>, vector<1x16x16xbf16>
    %226 = vector.shape_cast %225 : vector<1x16x16xbf16> to vector<16x16xbf16>
    %cst_157 = arith.constant dense<0.000000e+00> : vector<32x16xf32>
    %227 = tpu.matmul %218, %226, %cst_157 {dimension_numbers = #tpu.dot_dimension_numbers<[1], [0], [0], [1], [0, 0, 1, 1], [], []>} : vector<32x16xbf16>, vector<16x16xbf16>, vector<32x16xf32> -> vector<32x16xf32>
    %c14_158 = arith.constant 14 : index
    %c0_159 = arith.constant 0 : index
    %c0_160 = arith.constant 0 : index
    %228 = vector.load %arg3[%c14_158, %c0_159, %c0_160] : memref<26x32x16xf32, #tpu.memory_space<vmem>>, vector<1x32x16xf32>
    %229 = vector.shape_cast %228 : vector<1x32x16xf32> to vector<32x16xf32>
    %230 = arith.addf %227, %229 : vector<32x16xf32>
    %c31 = arith.constant 31 : index
    %c0_161 = arith.constant 0 : index
    %c0_162 = arith.constant 0 : index
    %231 = vector.load %arg1[%c31, %c0_161, %c0_162] : memref<43x16x16xbf16, #tpu.memory_space<vmem>>, vector<1x16x16xbf16>
    %232 = vector.shape_cast %231 : vector<1x16x16xbf16> to vector<16x16xbf16>
    %cst_163 = arith.constant dense<0.000000e+00> : vector<32x16xf32>
    %233 = tpu.matmul %218, %232, %cst_163 {dimension_numbers = #tpu.dot_dimension_numbers<[1], [0], [0], [1], [0, 0, 1, 1], [], []>} : vector<32x16xbf16>, vector<16x16xbf16>, vector<32x16xf32> -> vector<32x16xf32>
    %c15_164 = arith.constant 15 : index
    %c0_165 = arith.constant 0 : index
    %c0_166 = arith.constant 0 : index
    %234 = vector.load %arg3[%c15_164, %c0_165, %c0_166] : memref<26x32x16xf32, #tpu.memory_space<vmem>>, vector<1x32x16xf32>
    %235 = vector.shape_cast %234 : vector<1x32x16xf32> to vector<32x16xf32>
    %236 = arith.addf %233, %235 : vector<32x16xf32>
    %c32 = arith.constant 32 : index
    %c0_167 = arith.constant 0 : index
    %c0_168 = arith.constant 0 : index
    %237 = vector.load %arg1[%c32, %c0_167, %c0_168] : memref<43x16x16xbf16, #tpu.memory_space<vmem>>, vector<1x16x16xbf16>
    %238 = vector.shape_cast %237 : vector<1x16x16xbf16> to vector<16x16xbf16>
    %cst_169 = arith.constant dense<0.000000e+00> : vector<32x16xf32>
    %239 = tpu.matmul %218, %238, %cst_169 {dimension_numbers = #tpu.dot_dimension_numbers<[1], [0], [0], [1], [0, 0, 1, 1], [], []>} : vector<32x16xbf16>, vector<16x16xbf16>, vector<32x16xf32> -> vector<32x16xf32>
    %c16_170 = arith.constant 16 : index
    %c0_171 = arith.constant 0 : index
    %c0_172 = arith.constant 0 : index
    %240 = vector.load %arg3[%c16_170, %c0_171, %c0_172] : memref<26x32x16xf32, #tpu.memory_space<vmem>>, vector<1x32x16xf32>
    %241 = vector.shape_cast %240 : vector<1x32x16xf32> to vector<32x16xf32>
    %242 = arith.addf %239, %241 : vector<32x16xf32>
    %c33 = arith.constant 33 : index
    %c0_173 = arith.constant 0 : index
    %c0_174 = arith.constant 0 : index
    %243 = vector.load %arg1[%c33, %c0_173, %c0_174] : memref<43x16x16xbf16, #tpu.memory_space<vmem>>, vector<1x16x16xbf16>
    %244 = vector.shape_cast %243 : vector<1x16x16xbf16> to vector<16x16xbf16>
    %cst_175 = arith.constant dense<0.000000e+00> : vector<32x16xf32>
    %245 = tpu.matmul %218, %244, %cst_175 {dimension_numbers = #tpu.dot_dimension_numbers<[1], [0], [0], [1], [0, 0, 1, 1], [], []>} : vector<32x16xbf16>, vector<16x16xbf16>, vector<32x16xf32> -> vector<32x16xf32>
    %c17_176 = arith.constant 17 : index
    %c0_177 = arith.constant 0 : index
    %c0_178 = arith.constant 0 : index
    %246 = vector.load %arg3[%c17_176, %c0_177, %c0_178] : memref<26x32x16xf32, #tpu.memory_space<vmem>>, vector<1x32x16xf32>
    %247 = vector.shape_cast %246 : vector<1x32x16xf32> to vector<32x16xf32>
    %248 = arith.addf %245, %247 : vector<32x16xf32>
    %c34 = arith.constant 34 : index
    %c0_179 = arith.constant 0 : index
    %c0_180 = arith.constant 0 : index
    %249 = vector.load %arg1[%c34, %c0_179, %c0_180] : memref<43x16x16xbf16, #tpu.memory_space<vmem>>, vector<1x16x16xbf16>
    %250 = vector.shape_cast %249 : vector<1x16x16xbf16> to vector<16x16xbf16>
    %cst_181 = arith.constant dense<0.000000e+00> : vector<32x16xf32>
    %251 = tpu.matmul %218, %250, %cst_181 {dimension_numbers = #tpu.dot_dimension_numbers<[1], [0], [0], [1], [0, 0, 1, 1], [], []>} : vector<32x16xbf16>, vector<16x16xbf16>, vector<32x16xf32> -> vector<32x16xf32>
    %c18_182 = arith.constant 18 : index
    %c0_183 = arith.constant 0 : index
    %c0_184 = arith.constant 0 : index
    %252 = vector.load %arg3[%c18_182, %c0_183, %c0_184] : memref<26x32x16xf32, #tpu.memory_space<vmem>>, vector<1x32x16xf32>
    %253 = vector.shape_cast %252 : vector<1x32x16xf32> to vector<32x16xf32>
    %254 = arith.addf %251, %253 : vector<32x16xf32>
    %cst_185 = arith.constant 0.000000e+00 : f32
    %255 = vector.broadcast %cst_185 : f32 to vector<16x16xf32>
    %256 = vector.extract_strided_slice %224 {offsets = [0, 0], sizes = [16, 16], strides = [1, 1]} : vector<32x16xf32> to vector<16x16xf32>
    %257 = vector.extract_strided_slice %230 {offsets = [0, 0], sizes = [16, 16], strides = [1, 1]} : vector<32x16xf32> to vector<16x16xf32>
    %258 = vector.extract_strided_slice %236 {offsets = [0, 0], sizes = [16, 16], strides = [1, 1]} : vector<32x16xf32> to vector<16x16xf32>
    %259 = arith.truncf %255 : vector<16x16xf32> to vector<16x16xbf16>
    %c35 = arith.constant 35 : index
    %c0_186 = arith.constant 0 : index
    %c0_187 = arith.constant 0 : index
    %260 = vector.load %arg1[%c35, %c0_186, %c0_187] : memref<43x16x16xbf16, #tpu.memory_space<vmem>>, vector<1x16x16xbf16>
    %261 = vector.shape_cast %260 : vector<1x16x16xbf16> to vector<16x16xbf16>
    %cst_188 = arith.constant dense<0.000000e+00> : vector<16x16xf32>
    %262 = tpu.matmul %259, %261, %cst_188 {dimension_numbers = #tpu.dot_dimension_numbers<[1], [0], [0], [1], [0, 0, 1, 1], [], []>} : vector<16x16xbf16>, vector<16x16xbf16>, vector<16x16xf32> -> vector<16x16xf32>
    %c19_189 = arith.constant 19 : index
    %c0_190 = arith.constant 0 : index
    %c0_191 = arith.constant 0 : index
    %263 = vector.load %arg3[%c19_189, %c0_190, %c0_191] : memref<26x32x16xf32, #tpu.memory_space<vmem>>, vector<1x32x16xf32>
    %264 = vector.shape_cast %263 : vector<1x32x16xf32> to vector<32x16xf32>
    %265 = vector.extract_strided_slice %264 {offsets = [0, 0], sizes = [16, 16], strides = [1, 1]} : vector<32x16xf32> to vector<16x16xf32>
    %266 = arith.addf %262, %265 : vector<16x16xf32>
    %c36 = arith.constant 36 : index
    %c0_192 = arith.constant 0 : index
    %c0_193 = arith.constant 0 : index
    %267 = vector.load %arg1[%c36, %c0_192, %c0_193] : memref<43x16x16xbf16, #tpu.memory_space<vmem>>, vector<1x16x16xbf16>
    %268 = vector.shape_cast %267 : vector<1x16x16xbf16> to vector<16x16xbf16>
    %cst_194 = arith.constant dense<0.000000e+00> : vector<16x16xf32>
    %269 = tpu.matmul %259, %268, %cst_194 {dimension_numbers = #tpu.dot_dimension_numbers<[1], [0], [0], [1], [0, 0, 1, 1], [], []>} : vector<16x16xbf16>, vector<16x16xbf16>, vector<16x16xf32> -> vector<16x16xf32>
    %c20_195 = arith.constant 20 : index
    %c0_196 = arith.constant 0 : index
    %c0_197 = arith.constant 0 : index
    %270 = vector.load %arg3[%c20_195, %c0_196, %c0_197] : memref<26x32x16xf32, #tpu.memory_space<vmem>>, vector<1x32x16xf32>
    %271 = vector.shape_cast %270 : vector<1x32x16xf32> to vector<32x16xf32>
    %272 = vector.extract_strided_slice %271 {offsets = [0, 0], sizes = [16, 16], strides = [1, 1]} : vector<32x16xf32> to vector<16x16xf32>
    %273 = arith.addf %269, %272 : vector<16x16xf32>
    %c37 = arith.constant 37 : index
    %c0_198 = arith.constant 0 : index
    %c0_199 = arith.constant 0 : index
    %274 = vector.load %arg1[%c37, %c0_198, %c0_199] : memref<43x16x16xbf16, #tpu.memory_space<vmem>>, vector<1x16x16xbf16>
    %275 = vector.shape_cast %274 : vector<1x16x16xbf16> to vector<16x16xbf16>
    %cst_200 = arith.constant dense<0.000000e+00> : vector<16x16xf32>
    %276 = tpu.matmul %259, %275, %cst_200 {dimension_numbers = #tpu.dot_dimension_numbers<[1], [0], [0], [1], [0, 0, 1, 1], [], []>} : vector<16x16xbf16>, vector<16x16xbf16>, vector<16x16xf32> -> vector<16x16xf32>
    %c21_201 = arith.constant 21 : index
    %c0_202 = arith.constant 0 : index
    %c0_203 = arith.constant 0 : index
    %277 = vector.load %arg3[%c21_201, %c0_202, %c0_203] : memref<26x32x16xf32, #tpu.memory_space<vmem>>, vector<1x32x16xf32>
    %278 = vector.shape_cast %277 : vector<1x32x16xf32> to vector<32x16xf32>
    %279 = vector.extract_strided_slice %278 {offsets = [0, 0], sizes = [16, 16], strides = [1, 1]} : vector<32x16xf32> to vector<16x16xf32>
    %280 = arith.addf %276, %279 : vector<16x16xf32>
    %281 = arith.addf %256, %266 : vector<16x16xf32>
    %282 = arith.negf %281 : vector<16x16xf32>
    %283 = math.exp %282 : vector<16x16xf32>
    %cst_204 = arith.constant 1.000000e+00 : f32
    %284 = vector.broadcast %cst_204 : f32 to vector<16x16xf32>
    %285 = arith.addf %284, %283 : vector<16x16xf32>
    %286 = arith.divf %284, %285 : vector<16x16xf32>
    %287 = arith.addf %257, %273 : vector<16x16xf32>
    %288 = arith.negf %287 : vector<16x16xf32>
    %289 = math.exp %288 : vector<16x16xf32>
    %cst_205 = arith.constant 1.000000e+00 : f32
    %290 = vector.broadcast %cst_205 : f32 to vector<16x16xf32>
    %291 = arith.addf %290, %289 : vector<16x16xf32>
    %292 = arith.divf %290, %291 : vector<16x16xf32>
    %293 = arith.mulf %286, %280 : vector<16x16xf32>
    %294 = arith.addf %258, %293 : vector<16x16xf32>
    %295 = math.tanh %294 : vector<16x16xf32>
    %cst_206 = arith.constant 1.000000e+00 : f32
    %296 = vector.broadcast %cst_206 : f32 to vector<16x16xf32>
    %297 = arith.subf %296, %292 : vector<16x16xf32>
    %298 = arith.mulf %297, %295 : vector<16x16xf32>
    %299 = arith.mulf %292, %255 : vector<16x16xf32>
    %300 = arith.addf %298, %299 : vector<16x16xf32>
    %301 = vector.extract_strided_slice %224 {offsets = [16, 0], sizes = [16, 16], strides = [1, 1]} : vector<32x16xf32> to vector<16x16xf32>
    %302 = vector.extract_strided_slice %230 {offsets = [16, 0], sizes = [16, 16], strides = [1, 1]} : vector<32x16xf32> to vector<16x16xf32>
    %303 = vector.extract_strided_slice %236 {offsets = [16, 0], sizes = [16, 16], strides = [1, 1]} : vector<32x16xf32> to vector<16x16xf32>
    %304 = arith.truncf %300 : vector<16x16xf32> to vector<16x16xbf16>
    %c35_207 = arith.constant 35 : index
    %c0_208 = arith.constant 0 : index
    %c0_209 = arith.constant 0 : index
    %305 = vector.load %arg1[%c35_207, %c0_208, %c0_209] : memref<43x16x16xbf16, #tpu.memory_space<vmem>>, vector<1x16x16xbf16>
    %306 = vector.shape_cast %305 : vector<1x16x16xbf16> to vector<16x16xbf16>
    %cst_210 = arith.constant dense<0.000000e+00> : vector<16x16xf32>
    %307 = tpu.matmul %304, %306, %cst_210 {dimension_numbers = #tpu.dot_dimension_numbers<[1], [0], [0], [1], [0, 0, 1, 1], [], []>} : vector<16x16xbf16>, vector<16x16xbf16>, vector<16x16xf32> -> vector<16x16xf32>
    %c19_211 = arith.constant 19 : index
    %c0_212 = arith.constant 0 : index
    %c0_213 = arith.constant 0 : index
    %308 = vector.load %arg3[%c19_211, %c0_212, %c0_213] : memref<26x32x16xf32, #tpu.memory_space<vmem>>, vector<1x32x16xf32>
    %309 = vector.shape_cast %308 : vector<1x32x16xf32> to vector<32x16xf32>
    %310 = vector.extract_strided_slice %309 {offsets = [0, 0], sizes = [16, 16], strides = [1, 1]} : vector<32x16xf32> to vector<16x16xf32>
    %311 = arith.addf %307, %310 : vector<16x16xf32>
    %c36_214 = arith.constant 36 : index
    %c0_215 = arith.constant 0 : index
    %c0_216 = arith.constant 0 : index
    %312 = vector.load %arg1[%c36_214, %c0_215, %c0_216] : memref<43x16x16xbf16, #tpu.memory_space<vmem>>, vector<1x16x16xbf16>
    %313 = vector.shape_cast %312 : vector<1x16x16xbf16> to vector<16x16xbf16>
    %cst_217 = arith.constant dense<0.000000e+00> : vector<16x16xf32>
    %314 = tpu.matmul %304, %313, %cst_217 {dimension_numbers = #tpu.dot_dimension_numbers<[1], [0], [0], [1], [0, 0, 1, 1], [], []>} : vector<16x16xbf16>, vector<16x16xbf16>, vector<16x16xf32> -> vector<16x16xf32>
    %c20_218 = arith.constant 20 : index
    %c0_219 = arith.constant 0 : index
    %c0_220 = arith.constant 0 : index
    %315 = vector.load %arg3[%c20_218, %c0_219, %c0_220] : memref<26x32x16xf32, #tpu.memory_space<vmem>>, vector<1x32x16xf32>
    %316 = vector.shape_cast %315 : vector<1x32x16xf32> to vector<32x16xf32>
    %317 = vector.extract_strided_slice %316 {offsets = [0, 0], sizes = [16, 16], strides = [1, 1]} : vector<32x16xf32> to vector<16x16xf32>
    %318 = arith.addf %314, %317 : vector<16x16xf32>
    %c37_221 = arith.constant 37 : index
    %c0_222 = arith.constant 0 : index
    %c0_223 = arith.constant 0 : index
    %319 = vector.load %arg1[%c37_221, %c0_222, %c0_223] : memref<43x16x16xbf16, #tpu.memory_space<vmem>>, vector<1x16x16xbf16>
    %320 = vector.shape_cast %319 : vector<1x16x16xbf16> to vector<16x16xbf16>
    %cst_224 = arith.constant dense<0.000000e+00> : vector<16x16xf32>
    %321 = tpu.matmul %304, %320, %cst_224 {dimension_numbers = #tpu.dot_dimension_numbers<[1], [0], [0], [1], [0, 0, 1, 1], [], []>} : vector<16x16xbf16>, vector<16x16xbf16>, vector<16x16xf32> -> vector<16x16xf32>
    %c21_225 = arith.constant 21 : index
    %c0_226 = arith.constant 0 : index
    %c0_227 = arith.constant 0 : index
    %322 = vector.load %arg3[%c21_225, %c0_226, %c0_227] : memref<26x32x16xf32, #tpu.memory_space<vmem>>, vector<1x32x16xf32>
    %323 = vector.shape_cast %322 : vector<1x32x16xf32> to vector<32x16xf32>
    %324 = vector.extract_strided_slice %323 {offsets = [0, 0], sizes = [16, 16], strides = [1, 1]} : vector<32x16xf32> to vector<16x16xf32>
    %325 = arith.addf %321, %324 : vector<16x16xf32>
    %326 = arith.addf %301, %311 : vector<16x16xf32>
    %327 = arith.negf %326 : vector<16x16xf32>
    %328 = math.exp %327 : vector<16x16xf32>
    %cst_228 = arith.constant 1.000000e+00 : f32
    %329 = vector.broadcast %cst_228 : f32 to vector<16x16xf32>
    %330 = arith.addf %329, %328 : vector<16x16xf32>
    %331 = arith.divf %329, %330 : vector<16x16xf32>
    %332 = arith.addf %302, %318 : vector<16x16xf32>
    %333 = arith.negf %332 : vector<16x16xf32>
    %334 = math.exp %333 : vector<16x16xf32>
    %cst_229 = arith.constant 1.000000e+00 : f32
    %335 = vector.broadcast %cst_229 : f32 to vector<16x16xf32>
    %336 = arith.addf %335, %334 : vector<16x16xf32>
    %337 = arith.divf %335, %336 : vector<16x16xf32>
    %338 = arith.mulf %331, %325 : vector<16x16xf32>
    %339 = arith.addf %303, %338 : vector<16x16xf32>
    %340 = math.tanh %339 : vector<16x16xf32>
    %cst_230 = arith.constant 1.000000e+00 : f32
    %341 = vector.broadcast %cst_230 : f32 to vector<16x16xf32>
    %342 = arith.subf %341, %337 : vector<16x16xf32>
    %343 = arith.mulf %342, %340 : vector<16x16xf32>
    %344 = arith.mulf %337, %300 : vector<16x16xf32>
    %345 = arith.addf %343, %344 : vector<16x16xf32>
    %346 = vector.extract_strided_slice %242 {offsets = [16, 0], sizes = [16, 16], strides = [1, 1]} : vector<32x16xf32> to vector<16x16xf32>
    %347 = vector.extract_strided_slice %248 {offsets = [16, 0], sizes = [16, 16], strides = [1, 1]} : vector<32x16xf32> to vector<16x16xf32>
    %348 = vector.extract_strided_slice %254 {offsets = [16, 0], sizes = [16, 16], strides = [1, 1]} : vector<32x16xf32> to vector<16x16xf32>
    %349 = arith.truncf %255 : vector<16x16xf32> to vector<16x16xbf16>
    %c38 = arith.constant 38 : index
    %c0_231 = arith.constant 0 : index
    %c0_232 = arith.constant 0 : index
    %350 = vector.load %arg1[%c38, %c0_231, %c0_232] : memref<43x16x16xbf16, #tpu.memory_space<vmem>>, vector<1x16x16xbf16>
    %351 = vector.shape_cast %350 : vector<1x16x16xbf16> to vector<16x16xbf16>
    %cst_233 = arith.constant dense<0.000000e+00> : vector<16x16xf32>
    %352 = tpu.matmul %349, %351, %cst_233 {dimension_numbers = #tpu.dot_dimension_numbers<[1], [0], [0], [1], [0, 0, 1, 1], [], []>} : vector<16x16xbf16>, vector<16x16xbf16>, vector<16x16xf32> -> vector<16x16xf32>
    %c22_234 = arith.constant 22 : index
    %c0_235 = arith.constant 0 : index
    %c0_236 = arith.constant 0 : index
    %353 = vector.load %arg3[%c22_234, %c0_235, %c0_236] : memref<26x32x16xf32, #tpu.memory_space<vmem>>, vector<1x32x16xf32>
    %354 = vector.shape_cast %353 : vector<1x32x16xf32> to vector<32x16xf32>
    %355 = vector.extract_strided_slice %354 {offsets = [0, 0], sizes = [16, 16], strides = [1, 1]} : vector<32x16xf32> to vector<16x16xf32>
    %356 = arith.addf %352, %355 : vector<16x16xf32>
    %c39 = arith.constant 39 : index
    %c0_237 = arith.constant 0 : index
    %c0_238 = arith.constant 0 : index
    %357 = vector.load %arg1[%c39, %c0_237, %c0_238] : memref<43x16x16xbf16, #tpu.memory_space<vmem>>, vector<1x16x16xbf16>
    %358 = vector.shape_cast %357 : vector<1x16x16xbf16> to vector<16x16xbf16>
    %cst_239 = arith.constant dense<0.000000e+00> : vector<16x16xf32>
    %359 = tpu.matmul %349, %358, %cst_239 {dimension_numbers = #tpu.dot_dimension_numbers<[1], [0], [0], [1], [0, 0, 1, 1], [], []>} : vector<16x16xbf16>, vector<16x16xbf16>, vector<16x16xf32> -> vector<16x16xf32>
    %c23_240 = arith.constant 23 : index
    %c0_241 = arith.constant 0 : index
    %c0_242 = arith.constant 0 : index
    %360 = vector.load %arg3[%c23_240, %c0_241, %c0_242] : memref<26x32x16xf32, #tpu.memory_space<vmem>>, vector<1x32x16xf32>
    %361 = vector.shape_cast %360 : vector<1x32x16xf32> to vector<32x16xf32>
    %362 = vector.extract_strided_slice %361 {offsets = [0, 0], sizes = [16, 16], strides = [1, 1]} : vector<32x16xf32> to vector<16x16xf32>
    %363 = arith.addf %359, %362 : vector<16x16xf32>
    %c40 = arith.constant 40 : index
    %c0_243 = arith.constant 0 : index
    %c0_244 = arith.constant 0 : index
    %364 = vector.load %arg1[%c40, %c0_243, %c0_244] : memref<43x16x16xbf16, #tpu.memory_space<vmem>>, vector<1x16x16xbf16>
    %365 = vector.shape_cast %364 : vector<1x16x16xbf16> to vector<16x16xbf16>
    %cst_245 = arith.constant dense<0.000000e+00> : vector<16x16xf32>
    %366 = tpu.matmul %349, %365, %cst_245 {dimension_numbers = #tpu.dot_dimension_numbers<[1], [0], [0], [1], [0, 0, 1, 1], [], []>} : vector<16x16xbf16>, vector<16x16xbf16>, vector<16x16xf32> -> vector<16x16xf32>
    %c24_246 = arith.constant 24 : index
    %c0_247 = arith.constant 0 : index
    %c0_248 = arith.constant 0 : index
    %367 = vector.load %arg3[%c24_246, %c0_247, %c0_248] : memref<26x32x16xf32, #tpu.memory_space<vmem>>, vector<1x32x16xf32>
    %368 = vector.shape_cast %367 : vector<1x32x16xf32> to vector<32x16xf32>
    %369 = vector.extract_strided_slice %368 {offsets = [0, 0], sizes = [16, 16], strides = [1, 1]} : vector<32x16xf32> to vector<16x16xf32>
    %370 = arith.addf %366, %369 : vector<16x16xf32>
    %371 = arith.addf %346, %356 : vector<16x16xf32>
    %372 = arith.negf %371 : vector<16x16xf32>
    %373 = math.exp %372 : vector<16x16xf32>
    %cst_249 = arith.constant 1.000000e+00 : f32
    %374 = vector.broadcast %cst_249 : f32 to vector<16x16xf32>
    %375 = arith.addf %374, %373 : vector<16x16xf32>
    %376 = arith.divf %374, %375 : vector<16x16xf32>
    %377 = arith.addf %347, %363 : vector<16x16xf32>
    %378 = arith.negf %377 : vector<16x16xf32>
    %379 = math.exp %378 : vector<16x16xf32>
    %cst_250 = arith.constant 1.000000e+00 : f32
    %380 = vector.broadcast %cst_250 : f32 to vector<16x16xf32>
    %381 = arith.addf %380, %379 : vector<16x16xf32>
    %382 = arith.divf %380, %381 : vector<16x16xf32>
    %383 = arith.mulf %376, %370 : vector<16x16xf32>
    %384 = arith.addf %348, %383 : vector<16x16xf32>
    %385 = math.tanh %384 : vector<16x16xf32>
    %cst_251 = arith.constant 1.000000e+00 : f32
    %386 = vector.broadcast %cst_251 : f32 to vector<16x16xf32>
    %387 = arith.subf %386, %382 : vector<16x16xf32>
    %388 = arith.mulf %387, %385 : vector<16x16xf32>
    %389 = arith.mulf %382, %255 : vector<16x16xf32>
    %390 = arith.addf %388, %389 : vector<16x16xf32>
    %391 = vector.extract_strided_slice %242 {offsets = [0, 0], sizes = [16, 16], strides = [1, 1]} : vector<32x16xf32> to vector<16x16xf32>
    %392 = vector.extract_strided_slice %248 {offsets = [0, 0], sizes = [16, 16], strides = [1, 1]} : vector<32x16xf32> to vector<16x16xf32>
    %393 = vector.extract_strided_slice %254 {offsets = [0, 0], sizes = [16, 16], strides = [1, 1]} : vector<32x16xf32> to vector<16x16xf32>
    %394 = arith.truncf %390 : vector<16x16xf32> to vector<16x16xbf16>
    %c38_252 = arith.constant 38 : index
    %c0_253 = arith.constant 0 : index
    %c0_254 = arith.constant 0 : index
    %395 = vector.load %arg1[%c38_252, %c0_253, %c0_254] : memref<43x16x16xbf16, #tpu.memory_space<vmem>>, vector<1x16x16xbf16>
    %396 = vector.shape_cast %395 : vector<1x16x16xbf16> to vector<16x16xbf16>
    %cst_255 = arith.constant dense<0.000000e+00> : vector<16x16xf32>
    %397 = tpu.matmul %394, %396, %cst_255 {dimension_numbers = #tpu.dot_dimension_numbers<[1], [0], [0], [1], [0, 0, 1, 1], [], []>} : vector<16x16xbf16>, vector<16x16xbf16>, vector<16x16xf32> -> vector<16x16xf32>
    %c22_256 = arith.constant 22 : index
    %c0_257 = arith.constant 0 : index
    %c0_258 = arith.constant 0 : index
    %398 = vector.load %arg3[%c22_256, %c0_257, %c0_258] : memref<26x32x16xf32, #tpu.memory_space<vmem>>, vector<1x32x16xf32>
    %399 = vector.shape_cast %398 : vector<1x32x16xf32> to vector<32x16xf32>
    %400 = vector.extract_strided_slice %399 {offsets = [0, 0], sizes = [16, 16], strides = [1, 1]} : vector<32x16xf32> to vector<16x16xf32>
    %401 = arith.addf %397, %400 : vector<16x16xf32>
    %c39_259 = arith.constant 39 : index
    %c0_260 = arith.constant 0 : index
    %c0_261 = arith.constant 0 : index
    %402 = vector.load %arg1[%c39_259, %c0_260, %c0_261] : memref<43x16x16xbf16, #tpu.memory_space<vmem>>, vector<1x16x16xbf16>
    %403 = vector.shape_cast %402 : vector<1x16x16xbf16> to vector<16x16xbf16>
    %cst_262 = arith.constant dense<0.000000e+00> : vector<16x16xf32>
    %404 = tpu.matmul %394, %403, %cst_262 {dimension_numbers = #tpu.dot_dimension_numbers<[1], [0], [0], [1], [0, 0, 1, 1], [], []>} : vector<16x16xbf16>, vector<16x16xbf16>, vector<16x16xf32> -> vector<16x16xf32>
    %c23_263 = arith.constant 23 : index
    %c0_264 = arith.constant 0 : index
    %c0_265 = arith.constant 0 : index
    %405 = vector.load %arg3[%c23_263, %c0_264, %c0_265] : memref<26x32x16xf32, #tpu.memory_space<vmem>>, vector<1x32x16xf32>
    %406 = vector.shape_cast %405 : vector<1x32x16xf32> to vector<32x16xf32>
    %407 = vector.extract_strided_slice %406 {offsets = [0, 0], sizes = [16, 16], strides = [1, 1]} : vector<32x16xf32> to vector<16x16xf32>
    %408 = arith.addf %404, %407 : vector<16x16xf32>
    %c40_266 = arith.constant 40 : index
    %c0_267 = arith.constant 0 : index
    %c0_268 = arith.constant 0 : index
    %409 = vector.load %arg1[%c40_266, %c0_267, %c0_268] : memref<43x16x16xbf16, #tpu.memory_space<vmem>>, vector<1x16x16xbf16>
    %410 = vector.shape_cast %409 : vector<1x16x16xbf16> to vector<16x16xbf16>
    %cst_269 = arith.constant dense<0.000000e+00> : vector<16x16xf32>
    %411 = tpu.matmul %394, %410, %cst_269 {dimension_numbers = #tpu.dot_dimension_numbers<[1], [0], [0], [1], [0, 0, 1, 1], [], []>} : vector<16x16xbf16>, vector<16x16xbf16>, vector<16x16xf32> -> vector<16x16xf32>
    %c24_270 = arith.constant 24 : index
    %c0_271 = arith.constant 0 : index
    %c0_272 = arith.constant 0 : index
    %412 = vector.load %arg3[%c24_270, %c0_271, %c0_272] : memref<26x32x16xf32, #tpu.memory_space<vmem>>, vector<1x32x16xf32>
    %413 = vector.shape_cast %412 : vector<1x32x16xf32> to vector<32x16xf32>
    %414 = vector.extract_strided_slice %413 {offsets = [0, 0], sizes = [16, 16], strides = [1, 1]} : vector<32x16xf32> to vector<16x16xf32>
    %415 = arith.addf %411, %414 : vector<16x16xf32>
    %416 = arith.addf %391, %401 : vector<16x16xf32>
    %417 = arith.negf %416 : vector<16x16xf32>
    %418 = math.exp %417 : vector<16x16xf32>
    %cst_273 = arith.constant 1.000000e+00 : f32
    %419 = vector.broadcast %cst_273 : f32 to vector<16x16xf32>
    %420 = arith.addf %419, %418 : vector<16x16xf32>
    %421 = arith.divf %419, %420 : vector<16x16xf32>
    %422 = arith.addf %392, %408 : vector<16x16xf32>
    %423 = arith.negf %422 : vector<16x16xf32>
    %424 = math.exp %423 : vector<16x16xf32>
    %cst_274 = arith.constant 1.000000e+00 : f32
    %425 = vector.broadcast %cst_274 : f32 to vector<16x16xf32>
    %426 = arith.addf %425, %424 : vector<16x16xf32>
    %427 = arith.divf %425, %426 : vector<16x16xf32>
    %428 = arith.mulf %421, %415 : vector<16x16xf32>
    %429 = arith.addf %393, %428 : vector<16x16xf32>
    %430 = math.tanh %429 : vector<16x16xf32>
    %cst_275 = arith.constant 1.000000e+00 : f32
    %431 = vector.broadcast %cst_275 : f32 to vector<16x16xf32>
    %432 = arith.subf %431, %427 : vector<16x16xf32>
    %433 = arith.mulf %432, %430 : vector<16x16xf32>
    %434 = arith.mulf %427, %390 : vector<16x16xf32>
    %435 = arith.addf %433, %434 : vector<16x16xf32>
    %436 = tpu.concatenate %300, %345 in 0 : vector<16x16xf32>, vector<16x16xf32> -> vector<32x16xf32>
    %437 = tpu.concatenate %435, %390 in 0 : vector<16x16xf32>, vector<16x16xf32> -> vector<32x16xf32>
    %438 = arith.negf %436 : vector<32x16xf32>
    %439 = math.exp %438 : vector<32x16xf32>
    %cst_276 = arith.constant 1.000000e+00 : f32
    %440 = vector.broadcast %cst_276 : f32 to vector<32x16xf32>
    %441 = arith.addf %440, %439 : vector<32x16xf32>
    %442 = arith.divf %440, %441 : vector<32x16xf32>
    %443 = arith.mulf %436, %442 : vector<32x16xf32>
    %444 = arith.truncf %443 : vector<32x16xf32> to vector<32x16xbf16>
    %445 = arith.negf %437 : vector<32x16xf32>
    %446 = math.exp %445 : vector<32x16xf32>
    %cst_277 = arith.constant 1.000000e+00 : f32
    %447 = vector.broadcast %cst_277 : f32 to vector<32x16xf32>
    %448 = arith.addf %447, %446 : vector<32x16xf32>
    %449 = arith.divf %447, %448 : vector<32x16xf32>
    %450 = arith.mulf %437, %449 : vector<32x16xf32>
    %451 = arith.truncf %450 : vector<32x16xf32> to vector<32x16xbf16>
    %c41 = arith.constant 41 : index
    %c0_278 = arith.constant 0 : index
    %c0_279 = arith.constant 0 : index
    %452 = vector.load %arg1[%c41, %c0_278, %c0_279] : memref<43x16x16xbf16, #tpu.memory_space<vmem>>, vector<1x16x16xbf16>
    %453 = vector.shape_cast %452 : vector<1x16x16xbf16> to vector<16x16xbf16>
    %cst_280 = arith.constant dense<0.000000e+00> : vector<32x16xf32>
    %454 = tpu.matmul %444, %453, %cst_280 {dimension_numbers = #tpu.dot_dimension_numbers<[1], [0], [0], [1], [0, 0, 1, 1], [], []>} : vector<32x16xbf16>, vector<16x16xbf16>, vector<32x16xf32> -> vector<32x16xf32>
    %c42 = arith.constant 42 : index
    %c0_281 = arith.constant 0 : index
    %c0_282 = arith.constant 0 : index
    %455 = vector.load %arg1[%c42, %c0_281, %c0_282] : memref<43x16x16xbf16, #tpu.memory_space<vmem>>, vector<1x16x16xbf16>
    %456 = vector.shape_cast %455 : vector<1x16x16xbf16> to vector<16x16xbf16>
    %cst_283 = arith.constant dense<0.000000e+00> : vector<32x16xf32>
    %457 = tpu.matmul %451, %456, %cst_283 {dimension_numbers = #tpu.dot_dimension_numbers<[1], [0], [0], [1], [0, 0, 1, 1], [], []>} : vector<32x16xbf16>, vector<16x16xbf16>, vector<32x16xf32> -> vector<32x16xf32>
    %458 = arith.addf %454, %457 : vector<32x16xf32>
    %c25_284 = arith.constant 25 : index
    %c0_285 = arith.constant 0 : index
    %c0_286 = arith.constant 0 : index
    %459 = vector.load %arg3[%c25_284, %c0_285, %c0_286] : memref<26x32x16xf32, #tpu.memory_space<vmem>>, vector<1x32x16xf32>
    %460 = vector.shape_cast %459 : vector<1x32x16xf32> to vector<32x16xf32>
    %461 = arith.addf %458, %460 : vector<32x16xf32>
    %462 = arith.negf %461 : vector<32x16xf32>
    %463 = math.exp %462 : vector<32x16xf32>
    %cst_287 = arith.constant 1.000000e+00 : f32
    %464 = vector.broadcast %cst_287 : f32 to vector<32x16xf32>
    %465 = arith.addf %464, %463 : vector<32x16xf32>
    %466 = arith.divf %464, %465 : vector<32x16xf32>
    %c0_288 = arith.constant 0 : index
    %c0_289 = arith.constant 0 : index
    %467 = vector.load %arg4[%c0_288, %c0_289] : memref<32x16xf32, #tpu.memory_space<vmem>>, vector<32x16xf32>
    tpu.vector_store %arg4[%c0_288, %c0_289], %466 {strides = array<i32>} : memref<32x16xf32, #tpu.memory_space<vmem>>, vector<32x16xf32>,
    return
  }
}

</mosaic_0001>

<bundles_post_ra>
// kernel: regressor_forward.1
= control target key start
LH: loop header
LB: loop body
LE: loop exit
PB: predicated region body
PF: predicated region fallthrough
CT: control target
= control target key end

     0   :  { %vm44_vm0 = vcmask 130048   ;;  %vm158_vm1 = vcmask 261120   ;;  %vm5111_vm2 = vmmov 0   ;;  %s5988_s1 = inlined_call_operand.vmem [shape: bf16[43,16,16], index: 1, kind: input, shape index: {}]   ;;  %s5989_s0 = inlined_call_operand.vmem [shape: bf16[32,16], index: 0, kind: input, shape index: {}]   ;;  %s5990_s2 = inlined_call_operand.vmem [shape: bf16[2,64,32], index: 2, kind: input, shape index: {}]   ;;  %s5991_s3 = inlined_call_operand.vmem [shape: f32[26,32,16], index: 3, kind: input, shape index: {}]   ;;  %s5992_s4 = inlined_call_operand.vmem [shape: f32[32,16], index: 4, kind: output, shape index: {}]  }
   0x1   :  { %v4817_v0 = vld [vmem:[%s5988_s1] sm:$0xff]   ;;  %v4819_v2 = vld [vmem:[%s5989_s0 + $0x8] sm:$0xff]   ;;  %v5157_v4 = vld [vmem:[%s5990_s2 + $0x10] sm:$0xff]  }
   0x2   :  { %v4818_v1 = vld [vmem:[%s5989_s0] sm:$0xff]   ;;  %4400 = vmatprep.subr.bf16.mxu0 %v4817_v0  ;;  %4414 = vmatprep.mubr.msk.bf16.mxu1 %vm158_vm1, %v5157_v4  ;;  %v26_v5 = vld [vmem:[%s5991_s3 + $0x10] sm:$0xff]  ;;  %v27_v8 = vld [vmem:[%s5991_s3 + $0x18] sm:$0xff] }
   0x3   :  { %4401 = vmatpush3.bf16.msra.mxu0 %v4817_v0  ;;  %4402 = vmatprep.mubr.msk.bf16.mxu0 %vm44_vm0, %v4818_v1  ;;  %v5152_v3 = vld [vmem:[%s5990_s2] sm:$0xff]   ;;  %v25_v11 = vld [vmem:[%s5991_s3 + $0x8] sm:$0xff]  ;;  %v4824_v39 = vld [vmem:[%s5988_s1 + $0x10] sm:$0xff]  }
   0x4   :  { %v24_v6 = vld [vmem:[%s5991_s3] sm:$0xff]  ;;  %v4825_v40 = vld [vmem:[%s5988_s1 + $0x28] sm:$0xff]   ;;  %v5201_v42 = vld [vmem:[%s5990_s2 + $0x18] sm:$0xff]  }
   0x5   :  { %v5196_v41 = vld [vmem:[%s5990_s2 + $0x8] sm:$0xff]   ;;  %v4826_v43 = vld [vmem:[%s5988_s1 + $0x20] sm:$0xff]   ;;  %v4828_v45 = vld [vmem:[%s5988_s1 + $0x30] sm:$0xff]  }
   0x6   :  { %4403 = vmatmul.mubr.msk.bf16.vlgmr.msra.gmra.mrb[0].mxu0 %vm44_vm0, %v4819_v2  ;;  %v4827_v44 = vld [vmem:[%s5988_s1 + $0x8] sm:$0xff]   ;;  %v4829_v46 = vld [vmem:[%s5988_s1 + $0x18] sm:$0xff]   ;;  %v3917_v60 = vld [vmem:[%s5991_s3 + $0x50] sm:$0xff] }
   0x7   :  { %4410 = vmatprep.mubr.msk.bf16.mxu0 %vm158_vm1, %v5152_v3  ;;  %v4830_v59 = vld [vmem:[%s5988_s1 + $0x38] sm:$0xff]   ;;  %v3915_v61 = vld [vmem:[%s5991_s3 + $0x40] sm:$0xff] }
   0x8   :  { %v3918_v0 = vld [vmem:[%s5991_s3 + $0x58] sm:$0xff] }
  0xd9   :  { %v4404_v7 = vpop.f32.mrb[0].mxu0 }
  0xda   :  { %v94_v9 = vadd.f32 %v4404_v7, %v26_v5  ;;  %v85_v10 = vpop.f32.mrb[1].mxu0 }
  0xdb   :  { %v86_v12 = vadd.f32 %v85_v10, %v24_v6  ;;  %v4405_v13 = vpop.f32.mrb[2].mxu0  ;;  %v3916_v6 = vld [vmem:[%s5991_s3 + $0x48] sm:$0xff] }
  0xdc   :  { %v3871_v14 = vmul.f32 -1.442695, %v94_v9  ;;  %v97_v15 = vadd.f32 %v4405_v13, %v27_v8  ;;  %v88_v16 = vpop.f32.mrb[3].mxu0 }
  0xdd   :  { %v3869_v17 = vmul.f32 -1.442695, %v86_v12  ;;  %v89_v18 = vadd.f32 %v88_v16, %v25_v11 }
  0xde   :  { %4870 = vpow2.f32 %v3871_v14  ;;  %v3872_v19 = vmul.f32 -1.442695, %v97_v15 }
  0xdf   :  { %4872 = vpow2.f32 %v3869_v17  ;;  %v3870_v20 = vmul.f32 -1.442695, %v89_v18 }
  0xe0   :  { %4874 = vpow2.f32 %v3872_v19  ;;  %v3896_v19 = vld [vmem:[%s5991_s3 + $0x20] sm:$0xff] }
  0xe1   :  { %4876 = vpow2.f32 %v3870_v20 }
  0xe8   :  { %v4871_v21 = vpop.eup %4870 }
  0xe9   :  { %v4873_v22 = vpop.eup %4872  ;;  %v114_v23 = vadd.f32 1.0, %v4871_v21 }
  0xea   :  { %v4875_v24 = vpop.eup %4874  ;;  %v112_v25 = vadd.f32 1.0, %v4873_v22  ;;  %v3899_v22 = vld [vmem:[%s5991_s3 + $0x38] sm:$0xff] }
  0xeb   :  { %v4877_v26 = vpop.eup %4876  ;;  %4878 = vrcp.f32 %v114_v23  ;;  %v115_v27 = vadd.f32 1.0, %v4875_v24  ;;  %v3897_v24 = vld [vmem:[%s5991_s3 + $0x28] sm:$0xff] }
  0xec   :  { %4880 = vrcp.f32 %v112_v25  ;;  %v113_v28 = vadd.f32 1.0, %v4877_v26 }
  0xed   :  { %4882 = vrcp.f32 %v115_v27 }
  0xee   :  { %4884 = vrcp.f32 %v113_v28 }
  0xf5   :  { %v4879_v29 = vpop.eup %4878 }
  0xf6   :  { %v4881_v30 = vpop.eup %4880  ;;  %v5181_v36 = vmul.f32 %v4879_v29, %v94_v9 }
  0xf7   :  { %v4883_v31 = vpop.eup %4882  ;;  %v5175_v33 = vmul.f32 %v4881_v30, %v86_v12 }
  0xf8   :  { %v4885_v32 = vpop.eup %4884  ;;  %v5177_v34 = vmul.f32 %v4883_v31, %v97_v15 }
  0xf9   :  { %v5179_v35 = vmul.f32 %v4885_v32, %v89_v18  ;;  %v3898_v18 = vld [vmem:[%s5991_s3 + $0x30] sm:$0xff] }
  0xfa   :  { %v129_v38 = vpack.c.bf16 %v5177_v34, %v5181_v36 }
  0xfb   :  { %v128_v37 = vpack.c.bf16 %v5179_v35, %v5175_v33 }
  0xfd   :  { %4406 = vmatprep.subr.bf16.mxu0 %v128_v37  ;;  %4742 = vmatprep.subr.bf16.mxu1 %v128_v37 }
  0xfe   :  { %4407 = vmatpush3.bf16.msra.mxu0 %v128_v37  ;;  %4744 = vmatpush3.bf16.msra.mxu1 %v128_v37 }
  0xff   :  { %4408 = vmatprep.subr.bf16.mxu0 %v129_v38  ;;  %4743 = vmatprep.subr.bf16.mxu1 %v129_v38 }
 0x102   :  { %4409 = vmatpush3.bf16.msra.mxu0 %v129_v38  ;;  %4745 = vmatpush3.bf16.msra.mxu1 %v129_v38 }
 0x103   :  { %4418 = vmatprep.subr.bf16.mxu0 %v4824_v39  ;;  %4436 = vmatprep.subr.bf16.mxu1 %v4825_v40 }
 0x105   :  { %4411 = vmatmul.mubr.msk.bf16.vlgmr.msra.gmra.mrb[4].mxu0 %vm158_vm1, %v5196_v41  ;;  %4415 = vmatmul.mubr.msk.bf16.vlgmr.msra.gmra.mrb[0].mxu1 %vm158_vm1, %v5201_v42 }
 0x106   :  { %4420 = vmatprep.mubr.msk.bf16.mxu0 %vm44_vm0, %v128_v37  ;;  %4438 = vmatprep.mubr.msk.bf16.mxu1 %vm44_vm0, %v128_v37 }
 0x107   :  { %4419 = vmatpush3.bf16.msra.mxu0 %v4824_v39  ;;  %4437 = vmatpush3.bf16.msra.mxu1 %v4825_v40 }
 0x108   :  { %4442 = vmatprep.subr.bf16.mxu1 %v4826_v43  ;;  %4424 = vmatprep.subr.bf16.mxu0 %v4827_v44 }
 0x10d   :  { %4421 = vmatmul.mubr.msk.bf16.vlgmr.msra.gmra.mrb[8].mxu0 %vm44_vm0, %v129_v38  ;;  %4439 = vmatmul.mubr.msk.bf16.vlgmr.msra.gmra.mrb[4].mxu1 %vm44_vm0, %v129_v38 }
 0x10e   :  { %4443 = vmatpush3.bf16.msra.mxu1 %v4826_v43  ;;  %4425 = vmatpush3.bf16.msra.mxu0 %v4827_v44 }
 0x10f   :  { %4448 = vmatprep.subr.bf16.mxu1 %v4828_v45  ;;  %4430 = vmatprep.subr.bf16.mxu0 %v4829_v46 }
 0x1d8   :  { %v4412_v47 = vpop.f32.mrb[4].mxu0  ;;  %v4416_v48 = vpop.f32.mrb[0].mxu1 }
 0x1d9   :  { %v205_v49 = vpop.f32.mrb[5].mxu0  ;;  %v221_v50 = vpop.f32.mrb[1].mxu1 }
 0x1da   :  { %v4413_v51 = vpop.f32.mrb[6].mxu0  ;;  %v4417_v52 = vpop.f32.mrb[2].mxu1 }
 0x1db   :  { %v237_v53 = vpack.c.bf16 %v4413_v51, %v4412_v47  ;;  %v208_v54 = vpop.f32.mrb[7].mxu0  ;;  %v239_v55 = vpack.c.bf16 %v4417_v52, %v4416_v48  ;;  %v224_v56 = vpop.f32.mrb[3].mxu1 }
 0x1dc   :  { %v236_v57 = vpack.c.bf16 %v208_v54, %v205_v49  ;;  %v238_v58 = vpack.c.bf16 %v224_v56, %v221_v50  ;;  %v4831_v54 = vld [vmem:[%s5988_s1 + $0x48] sm:$0xff]   ;;  %v3925_v56 = vld [vmem:[%s5991_s3 + $0x60] sm:$0xff] }
 0x1de   :  { %4426 = vmatprep.mubr.msk.bf16.mxu0 %vm44_vm0, %v236_v57  ;;  %4444 = vmatprep.mubr.msk.bf16.mxu1 %vm44_vm0, %v236_v57  ;;  %v3927_v57 = vld [vmem:[%s5991_s3 + $0x70] sm:$0xff] }
 0x1df   :  { %4427 = vmatmul.mubr.msk.bf16.vlgmr.msra.gmra.mrb[8].mxu0 %vm44_vm0, %v237_v53  ;;  %4445 = vmatmul.mubr.msk.bf16.vlgmr.msra.gmra.mrb[4].mxu1 %vm44_vm0, %v237_v53 }
 0x1e0   :  { %4449 = vmatpush3.bf16.msra.mxu1 %v4828_v45  ;;  %4432 = vmatprep.mubr.msk.bf16.mxu0 %vm44_vm0, %v238_v58 }
 0x1e1   :  { %4450 = vmatprep.mubr.msk.bf16.mxu1 %vm44_vm0, %v238_v58  ;;  %4431 = vmatpush3.bf16.msra.mxu0 %v4829_v46 }
 0x1e2   :  { %4454 = vmatprep.subr.bf16.mxu0 %v4830_v59  ;;  %4472 = vmatprep.subr.bf16.mxu1 %v4831_v54 }
 0x1eb   :  { %4433 = vmatmul.mubr.msk.bf16.vlgmr.msra.gmra.mrb[8].mxu0 %vm44_vm0, %v239_v55  ;;  %4451 = vmatmul.mubr.msk.bf16.vlgmr.msra.gmra.mrb[4].mxu1 %vm44_vm0, %v239_v55  ;;  %v5266_v55 = vld [vmem:[%s5990_s2 + $0x20] sm:$0xff]  }
 0x1ec   :  { %4455 = vmatpush3.bf16.msra.mxu0 %v4830_v59  ;;  %4473 = vmatpush3.bf16.msra.mxu1 %v4831_v54  ;;  %v3928_v59 = vld [vmem:[%s5991_s3 + $0x78] sm:$0xff] }
 0x2be   :  { %v4434_v62 = vpop.f32.mrb[8].mxu0  ;;  %v4452_v63 = vpop.f32.mrb[4].mxu1 }
 0x2bf   :  { %v630_v1 = vadd.f32 %v4452_v63, %v3917_v60  ;;  %v417_v2 = vpop.f32.mrb[9].mxu0  ;;  %v604_v5 = vpop.f32.mrb[5].mxu1  ;;  %v443_v20 = vadd.f32 %v4434_v62, %v3898_v18 }
 0x2c0   :  { %v628_v7 = vadd.f32 %v3915_v61, %v604_v5  ;;  %v4435_v8 = vpop.f32.mrb[10].mxu0  ;;  %v4453_v9 = vpop.f32.mrb[6].mxu1  ;;  %v441_v21 = vadd.f32 %v3896_v19, %v417_v2  ;;  %v3926_v61 = vld [vmem:[%s5991_s3 + $0x68] sm:$0xff] }
 0x2c1   :  { %v3921_v10 = vmul.f32 -1.442695, %v630_v1  ;;  %v631_v11 = vadd.f32 %v4453_v9, %v3918_v0  ;;  %v420_v12 = vpop.f32.mrb[11].mxu0  ;;  %v607_v13 = vpop.f32.mrb[7].mxu1  ;;  %v444_v27 = vadd.f32 %v4435_v8, %v3899_v22 }
 0x2c2   :  { %v3919_v14 = vmul.f32 -1.442695, %v628_v7  ;;  %v629_v15 = vadd.f32 %v3916_v6, %v607_v13  ;;  %v442_v30 = vadd.f32 %v3897_v24, %v420_v12  ;;  %v5323_v12 = vld [vmem:[%s5990_s2 + $0x38] sm:$0xff]   ;;  %v4838_v13 = vld [vmem:[%s5988_s1 + $0x40] sm:$0xff]  }
 0x2c3   :  { %4886 = vpow2.f32 %v3921_v10  ;;  %v3922_v16 = vmul.f32 -1.442695, %v631_v11  ;;  %4478 = vmatprep.subr.bf16.mxu1 %v4838_v13 }
 0x2c4   :  { %4888 = vpow2.f32 %v3919_v14  ;;  %v3920_v17 = vmul.f32 -1.442695, %v629_v15  ;;  %v4839_v14 = vld [vmem:[%s5988_s1 + $0x68] sm:$0xff]   ;;  %v4840_v15 = vld [vmem:[%s5988_s1 + $0x50] sm:$0xff]  }
 0x2c5   :  { %4890 = vpow2.f32 %v3922_v16 }
 0x2c6   :  { %4892 = vpow2.f32 %v3920_v17 }
 0x2c7   :  { %4894 = vtanh.f32 %v443_v20 }
 0x2c8   :  { %4896 = vtanh.f32 %v441_v21 }
 0x2cd   :  { %v4887_v23 = vpop.eup %4886 }
 0x2ce   :  { %v4889_v25 = vpop.eup %4888  ;;  %v650_v26 = vadd.f32 1.0, %v4887_v23 }
 0x2cf   :  { %v648_v28 = vadd.f32 1.0, %v4889_v25  ;;  %v4891_v29 = vpop.eup %4890 }
 0x2d0   :  { %4898 = vrcp.f32 %v650_v26  ;;  %v651_v31 = vadd.f32 1.0, %v4891_v29  ;;  %v4893_v32 = vpop.eup %4892  ;;  %v3984_v29 = vld [vmem:[%s5991_s3 + $0xb0] sm:$0xff] }
 0x2d1   :  { %4900 = vrcp.f32 %v648_v28  ;;  %v649_v37 = vadd.f32 1.0, %v4893_v32  ;;  %v4895_v38 = vpop.eup %4894  ;;  %v4841_v28 = vld [vmem:[%s5988_s1 + $0x70] sm:$0xff]  }
 0x2d2   :  { %4902 = vtanh.f32 %v444_v27  ;;  %v4897_v39 = vpop.eup %4896 }
 0x2d3   :  { %4904 = vrcp.f32 %v651_v31 }
 0x2d4   :  { %4906 = vtanh.f32 %v442_v30  ;;  %v3982_v30 = vld [vmem:[%s5991_s3 + $0xa0] sm:$0xff] }
 0x2d5   :  { %4908 = vrcp.f32 %v649_v37  ;;  %v3985_v37 = vld [vmem:[%s5991_s3 + $0xb8] sm:$0xff] }
 0x2da   :  { %v4899_v40 = vpop.eup %4898 }
 0x2db   :  { %v4901_v43 = vpop.eup %4900  ;;  %v662_v44 = vmul.f32 %v4899_v40, %v4895_v38 }
 0x2dc   :  { %v4903_v45 = vpop.eup %4902  ;;  %v660_v46 = vmul.f32 %v4901_v43, %v4897_v39  ;;  %v3983_v43 = vld [vmem:[%s5991_s3 + $0xa8] sm:$0xff] }
 0x2dd   :  { %v4905_v47 = vpop.eup %4904 }
 0x2de   :  { %v4907_v48 = vpop.eup %4906  ;;  %v663_v49 = vmul.f32 %v4905_v47, %v4903_v45 }
 0x2df   :  { %v4909_v50 = vpop.eup %4908 }
 0x2e0   :  { %v661_v51 = vmul.f32 %v4909_v50, %v4907_v48  ;;  %v665_v52 = vpack.c.bf16 %v663_v49, %v662_v44 }
 0x2e2   :  { %v664_v53 = vpack.c.bf16 %v661_v51, %v660_v46 }
 0x2e4   :  { %4456 = vmatprep.mubr.msk.bf16.mxu0 %vm44_vm0, %v664_v53 }
 0x2e5   :  { %4457 = vmatmul.mubr.msk.bf16.vlgmr.msra.gmra.mrb[12].mxu0 %vm44_vm0, %v665_v52 }
 0x2e6   :  { %4464 = vmatprep.mubr.msk.bf16.mxu0 %vm158_vm1, %v5266_v55 }
 0x3b8   :  { %v4458_v58 = vpop.f32.mrb[12].mxu0 }
 0x3b9   :  { %v720_v60 = vpop.f32.mrb[13].mxu0  ;;  %v729_v0 = vadd.f32 %v4458_v58, %v3927_v57  ;;  %v3963_v57 = vld [vmem:[%s5991_s3 + $0x80] sm:$0xff] }
 0x3ba   :  { %v721_v62 = vadd.f32 %v3925_v56, %v720_v60  ;;  %v4459_v63 = vpop.f32.mrb[14].mxu0  ;;  %v3965_v56 = vld [vmem:[%s5991_s3 + $0x90] sm:$0xff]  ;;  %v3966_v60 = vld [vmem:[%s5991_s3 + $0x98] sm:$0xff] }
 0x3bb   :  { %v732_v1 = vadd.f32 %v4459_v63, %v3928_v59  ;;  %v723_v2 = vpop.f32.mrb[15].mxu0  ;;  %v5292_v9 = vadd.f32 %v729_v0, %v5181_v36  ;;  %v4837_v36 = vld [vmem:[%s5988_s1 + $0x58] sm:$0xff]  }
 0x3bc   :  { %v724_v5 = vadd.f32 %v3926_v61, %v723_v2  ;;  %v5286_v7 = vadd.f32 %v721_v62, %v5175_v33  ;;  %v4836_v33 = vld [vmem:[%s5988_s1 + $0x60] sm:$0xff]   ;;  %v3964_v62 = vld [vmem:[%s5991_s3 + $0x88] sm:$0xff] }
 0x3bd   :  { %v5283_v6 = vadd.f32 %v732_v1, %v5177_v34  ;;  %v5306_v34 = vld [vmem:[%s5990_s2 + $0x28] sm:$0xff]  }
 0x3be   :  { %v5289_v8 = vadd.f32 %v724_v5, %v5179_v35  ;;  %v5311_v35 = vld [vmem:[%s5990_s2 + $0x30] sm:$0xff]  }
 0x3bf   :  { %v744_v11 = vpack.c.bf16 %v5283_v6, %v5292_v9 }
 0x3c0   :  { %v743_v10 = vpack.c.bf16 %v5289_v8, %v5286_v7 }
 0x3c2   :  { %4460 = vmatprep.subr.bf16.mxu0 %v743_v10  ;;  %4474 = vmatprep.mubr.msk.bf16.mxu1 %vm44_vm0, %v743_v10 }
 0x3c3   :  { %4461 = vmatpush3.bf16.msra.mxu0 %v743_v10  ;;  %4475 = vmatmul.mubr.msk.bf16.vlgmr.msra.gmra.mrb[8].mxu1 %vm44_vm0, %v744_v11 }
 0x3c4   :  { %4462 = vmatprep.subr.bf16.mxu0 %v744_v11  ;;  %4479 = vmatpush3.bf16.msra.mxu1 %v4838_v13 }
 0x3c5   :  { %4484 = vmatprep.subr.bf16.mxu1 %v4840_v15 }
 0x3c7   :  { %4463 = vmatpush3.bf16.msra.mxu0 %v744_v11 }
 0x3c8   :  { %4490 = vmatprep.subr.bf16.mxu0 %v4836_v33 }
 0x3ca   :  { %4465 = vmatmul.mubr.msk.bf16.vlgmr.msra.gmra.mrb[16].mxu0 %vm158_vm1, %v5306_v34 }
 0x3cb   :  { %4468 = vmatprep.mubr.msk.bf16.mxu0 %vm158_vm1, %v5311_v35  ;;  %4491 = vmatpush3.bf16.msra.mxu0 %v4836_v33 }
 0x3cc   :  { %4496 = vmatprep.subr.bf16.mxu0 %v4837_v36 }
 0x3d2   :  { %4469 = vmatmul.mubr.msk.bf16.gmra.mrb[20].mxu0 %vm158_vm1, %v5323_v12 }
 0x3d3   :  { %4492 = vmatprep.mubr.msk.bf16.mxu0 %vm44_vm0, %v743_v10 }
 0x3da   :  { %4493 = vmatmul.mubr.msk.bf16.vlgmr.msra.gmra.mrb[24].mxu0 %vm44_vm0, %v744_v11 }
 0x3db   :  { %4497 = vmatpush3.bf16.msra.mxu0 %v4837_v36 }
 0x3dc   :  { %4502 = vmatprep.subr.bf16.mxu0 %v4839_v14 }
 0x49d   :  { %v4466_v16 = vpop.f32.mrb[16].mxu0 }
 0x49e   :  { %v820_v17 = vpop.f32.mrb[17].mxu0 }
 0x49f   :  { %v4467_v18 = vpop.f32.mrb[18].mxu0 }
 0x4a0   :  { %v852_v19 = vpack.c.bf16 %v4467_v18, %v4466_v16  ;;  %v823_v20 = vpop.f32.mrb[19].mxu0 }
 0x4a1   :  { %v851_v21 = vpack.c.bf16 %v823_v20, %v820_v17 }
 0x4a3   :  { %4480 = vmatprep.mubr.msk.bf16.mxu1 %vm44_vm0, %v851_v21  ;;  %4498 = vmatprep.mubr.msk.bf16.mxu0 %vm44_vm0, %v851_v21 }
 0x4a4   :  { %4481 = vmatmul.mubr.msk.bf16.vlgmr.msra.gmra.mrb[8].mxu1 %vm44_vm0, %v852_v19  ;;  %4499 = vmatmul.mubr.msk.bf16.vlgmr.msra.gmra.mrb[24].mxu0 %vm44_vm0, %v852_v19 }
 0x4a5   :  { %4503 = vmatpush3.bf16.msra.mxu0 %v4839_v14  ;;  %v4470_v22 = vpop.f32.mrb[20].mxu0  ;;  %4485 = vmatpush3.bf16.msra.mxu1 %v4840_v15 }
 0x4a6   :  { %v836_v23 = vpop.f32.mrb[21].mxu0  ;;  %4508 = vmatprep.subr.bf16.mxu1 %v4841_v28 }
 0x4a7   :  { %v4471_v24 = vpop.f32.mrb[22].mxu0 }
 0x4a8   :  { %v854_v25 = vpack.c.bf16 %v4471_v24, %v4470_v22  ;;  %v839_v26 = vpop.f32.mrb[23].mxu0 }
 0x4a9   :  { %v853_v27 = vpack.c.bf16 %v839_v26, %v836_v23 }
 0x4ab   :  { %4486 = vmatprep.mubr.msk.bf16.mxu1 %vm44_vm0, %v853_v27  ;;  %4504 = vmatprep.mubr.msk.bf16.mxu0 %vm44_vm0, %v853_v27  ;;  %v4842_v27 = vld [vmem:[%s5988_s1 + $0x80] sm:$0xff]  }
 0x4ac   :  { %4526 = vmatprep.subr.bf16.mxu0 %v4842_v27 }
 0x4b0   :  { %4487 = vmatmul.mubr.msk.bf16.vlgmr.msra.gmra.mrb[8].mxu1 %vm44_vm0, %v854_v25  ;;  %4505 = vmatmul.mubr.msk.bf16.vlgmr.msra.gmra.mrb[24].mxu0 %vm44_vm0, %v854_v25 }
 0x4b1   :  { %4509 = vmatpush3.bf16.msra.mxu1 %v4841_v28  ;;  %4527 = vmatpush3.bf16.msra.mxu0 %v4842_v27  ;;  %v3992_v28 = vld [vmem:[%s5991_s3 + $0xc0] sm:$0xff] }
 0x583   :  { %v4488_v31 = vpop.f32.mrb[8].mxu1  ;;  %v4506_v32 = vpop.f32.mrb[24].mxu0 }
 0x584   :  { %v1245_v38 = vadd.f32 %v4506_v32, %v3984_v29  ;;  %v1032_v39 = vpop.f32.mrb[9].mxu1  ;;  %v1219_v40 = vpop.f32.mrb[25].mxu0  ;;  %v1058_v58 = vadd.f32 %v4488_v31, %v3965_v56  ;;  %v3994_v29 = vld [vmem:[%s5991_s3 + $0xd0] sm:$0xff]  ;;  %v3995_v31 = vld [vmem:[%s5991_s3 + $0xd8] sm:$0xff]  ;;  %v3993_v32 = vld [vmem:[%s5991_s3 + $0xc8] sm:$0xff] }
 0x585   :  { %v1243_v44 = vadd.f32 %v3982_v30, %v1219_v40  ;;  %v4489_v45 = vpop.f32.mrb[10].mxu1  ;;  %v4507_v46 = vpop.f32.mrb[26].mxu0  ;;  %v1056_v59 = vadd.f32 %v3963_v57, %v1032_v39 }
 0x586   :  { %v3988_v47 = vmul.f32 -1.442695, %v1245_v38  ;;  %v1246_v48 = vadd.f32 %v4507_v46, %v3985_v37  ;;  %v1035_v49 = vpop.f32.mrb[11].mxu1  ;;  %v1222_v50 = vpop.f32.mrb[27].mxu0  ;;  %v1059_v1 = vadd.f32 %v4489_v45, %v3966_v60 }
 0x587   :  { %v3986_v51 = vmul.f32 -1.442695, %v1243_v44  ;;  %v1244_v52 = vadd.f32 %v3983_v43, %v1222_v50  ;;  %v1057_v10 = vadd.f32 %v3964_v62, %v1035_v49 }
 0x588   :  { %4910 = vpow2.f32 %v3988_v47  ;;  %v3989_v53 = vmul.f32 -1.442695, %v1246_v48 }
 0x589   :  { %4912 = vpow2.f32 %v3986_v51  ;;  %v3987_v54 = vmul.f32 -1.442695, %v1244_v52  ;;  %v4843_v51 = vld [vmem:[%s5988_s1 + $0x98] sm:$0xff]   ;;  %v4844_v52 = vld [vmem:[%s5988_s1 + $0x90] sm:$0xff]  }
 0x58a   :  { %4914 = vpow2.f32 %v3989_v53  ;;  %v4845_v53 = vld [vmem:[%s5988_s1 + $0x78] sm:$0xff]  }
 0x58b   :  { %4916 = vpow2.f32 %v3987_v54  ;;  %4532 = vmatprep.subr.bf16.mxu0 %v4845_v53 }
 0x58c   :  { %4918 = vtanh.f32 %v1058_v58 }
 0x58d   :  { %4920 = vtanh.f32 %v1056_v59 }
 0x592   :  { %v4911_v61 = vpop.eup %4910 }
 0x593   :  { %v4913_v63 = vpop.eup %4912  ;;  %v1265_v0 = vadd.f32 1.0, %v4911_v61 }
 0x594   :  { %v1263_v2 = vadd.f32 1.0, %v4913_v63  ;;  %v4915_v5 = vpop.eup %4914 }
 0x595   :  { %4922 = vrcp.f32 %v1265_v0  ;;  %v1266_v11 = vadd.f32 1.0, %v4915_v5  ;;  %v4917_v33 = vpop.eup %4916  ;;  %v4039_v5 = vld [vmem:[%s5991_s3 + $0x110] sm:$0xff] }
 0x596   :  { %4924 = vrcp.f32 %v1263_v2  ;;  %v1264_v36 = vadd.f32 1.0, %v4917_v33  ;;  %v4919_v13 = vpop.eup %4918  ;;  %v4848_v2 = vld [vmem:[%s5988_s1 + $0xa8] sm:$0xff]  }
 0x597   :  { %4926 = vtanh.f32 %v1059_v1  ;;  %v4921_v14 = vpop.eup %4920 }
 0x598   :  { %4928 = vrcp.f32 %v1266_v11 }
 0x599   :  { %4930 = vtanh.f32 %v1057_v10  ;;  %v4037_v10 = vld [vmem:[%s5991_s3 + $0x100] sm:$0xff] }
 0x59a   :  { %4932 = vrcp.f32 %v1264_v36  ;;  %v4040_v36 = vld [vmem:[%s5991_s3 + $0x118] sm:$0xff] }
 0x59f   :  { %v4923_v15 = vpop.eup %4922 }
 0x5a0   :  { %v4925_v16 = vpop.eup %4924  ;;  %v1277_v17 = vmul.f32 %v4923_v15, %v4919_v13 }
 0x5a1   :  { %v4927_v18 = vpop.eup %4926  ;;  %v1275_v19 = vmul.f32 %v4925_v16, %v4921_v14  ;;  %v4038_v16 = vld [vmem:[%s5991_s3 + $0x108] sm:$0xff] }
 0x5a2   :  { %v4929_v20 = vpop.eup %4928 }
 0x5a3   :  { %v4931_v21 = vpop.eup %4930  ;;  %v1278_v22 = vmul.f32 %v4929_v20, %v4927_v18 }
 0x5a4   :  { %v4933_v23 = vpop.eup %4932 }
 0x5a5   :  { %v1276_v24 = vmul.f32 %v4933_v23, %v4931_v21  ;;  %v1280_v25 = vpack.c.bf16 %v1278_v22, %v1277_v17 }
 0x5a7   :  { %v1279_v26 = vpack.c.bf16 %v1276_v24, %v1275_v19 }
 0x5a9   :  { %4510 = vmatprep.mubr.msk.bf16.mxu1 %vm44_vm0, %v1279_v26 }
 0x5aa   :  { %4511 = vmatmul.mubr.msk.bf16.vlgmr.msra.gmra.mrb[12].mxu1 %vm44_vm0, %v1280_v25 }
 0x5ab   :  { %4518 = vmatprep.mubr.msk.bf16.mxu1 %vm158_vm1, %v5152_v3 }
 0x67d   :  { %v4512_v30 = vpop.f32.mrb[12].mxu1 }
 0x67e   :  { %v1335_v3 = vpop.f32.mrb[13].mxu1  ;;  %v1344_v39 = vadd.f32 %v4512_v30, %v3994_v29  ;;  %v4018_v29 = vld [vmem:[%s5991_s3 + $0xe0] sm:$0xff] }
 0x67f   :  { %v1336_v37 = vadd.f32 %v3992_v28, %v1335_v3  ;;  %v4513_v38 = vpop.f32.mrb[14].mxu1  ;;  %v4020_v28 = vld [vmem:[%s5991_s3 + $0xf0] sm:$0xff]  ;;  %v4021_v3 = vld [vmem:[%s5991_s3 + $0xf8] sm:$0xff] }
 0x680   :  { %v1347_v40 = vadd.f32 %v4513_v38, %v3995_v31  ;;  %v1338_v43 = vpop.f32.mrb[15].mxu1  ;;  %v5402_v48 = vadd.f32 %v1344_v39, %v5292_v9 }
 0x681   :  { %v1339_v44 = vadd.f32 %v3993_v32, %v1338_v43  ;;  %v5396_v46 = vadd.f32 %v1336_v37, %v5286_v7  ;;  %v4019_v37 = vld [vmem:[%s5991_s3 + $0xe8] sm:$0xff] }
 0x682   :  { %v5393_v45 = vadd.f32 %v1347_v40, %v5283_v6 }
 0x683   :  { %v5399_v47 = vadd.f32 %v1339_v44, %v5289_v8 }
 0x684   :  { %v1359_v50 = vpack.c.bf16 %v5393_v45, %v5402_v48 }
 0x685   :  { %v1358_v49 = vpack.c.bf16 %v5399_v47, %v5396_v46 }
 0x687   :  { %4514 = vmatprep.subr.bf16.mxu1 %v1358_v49  ;;  %4528 = vmatprep.mubr.msk.bf16.mxu0 %vm44_vm0, %v1358_v49 }
 0x688   :  { %4515 = vmatpush3.bf16.msra.mxu1 %v1358_v49  ;;  %4529 = vmatmul.mubr.msk.bf16.vlgmr.msra.gmra.mrb[28].mxu0 %vm44_vm0, %v1359_v50 }
 0x689   :  { %4516 = vmatprep.subr.bf16.mxu1 %v1359_v50  ;;  %4533 = vmatpush3.bf16.msra.mxu0 %v4845_v53 }
 0x68c   :  { %4517 = vmatpush3.bf16.msra.mxu1 %v1359_v50 }
 0x68d   :  { %4544 = vmatprep.subr.bf16.mxu1 %v4843_v51 }
 0x68f   :  { %4519 = vmatmul.mubr.msk.bf16.vlgmr.msra.gmra.mrb[16].mxu1 %vm158_vm1, %v5196_v41  ;;  %v4847_v41 = vld [vmem:[%s5988_s1 + $0x88] sm:$0xff]  }
 0x690   :  { %4522 = vmatprep.mubr.msk.bf16.mxu1 %vm158_vm1, %v5157_v4  ;;  %4545 = vmatpush3.bf16.msra.mxu1 %v4843_v51  ;;  %v4846_v4 = vld [vmem:[%s5988_s1 + $0xa0] sm:$0xff]  }
 0x691   :  { %4550 = vmatprep.subr.bf16.mxu1 %v4844_v52  ;;  %4538 = vmatprep.subr.bf16.mxu0 %v4847_v41 }
 0x697   :  { %4523 = vmatmul.mubr.msk.bf16.gmra.mrb[20].mxu1 %vm158_vm1, %v5201_v42 }
 0x698   :  { %4546 = vmatprep.mubr.msk.bf16.mxu1 %vm44_vm0, %v1358_v49 }
 0x69f   :  { %4547 = vmatmul.mubr.msk.bf16.vlgmr.msra.gmra.mrb[24].mxu1 %vm44_vm0, %v1359_v50 }
 0x6a0   :  { %4551 = vmatpush3.bf16.msra.mxu1 %v4844_v52 }
 0x6a1   :  { %4556 = vmatprep.subr.bf16.mxu1 %v4846_v4 }
 0x762   :  { %v4520_v42 = vpop.f32.mrb[16].mxu1 }
 0x763   :  { %v1394_v54 = vpop.f32.mrb[17].mxu1 }
 0x764   :  { %v4521_v56 = vpop.f32.mrb[18].mxu1 }
 0x765   :  { %v1426_v57 = vpack.c.bf16 %v4521_v56, %v4520_v42  ;;  %v1397_v58 = vpop.f32.mrb[19].mxu1 }
 0x766   :  { %v1425_v59 = vpack.c.bf16 %v1397_v58, %v1394_v54 }
 0x768   :  { %4534 = vmatprep.mubr.msk.bf16.mxu0 %vm44_vm0, %v1425_v59  ;;  %4552 = vmatprep.mubr.msk.bf16.mxu1 %vm44_vm0, %v1425_v59 }
 0x769   :  { %4535 = vmatmul.mubr.msk.bf16.vlgmr.msra.gmra.mrb[28].mxu0 %vm44_vm0, %v1426_v57  ;;  %4553 = vmatmul.mubr.msk.bf16.vlgmr.msra.gmra.mrb[24].mxu1 %vm44_vm0, %v1426_v57 }
 0x76a   :  { %4557 = vmatpush3.bf16.msra.mxu1 %v4846_v4  ;;  %v4524_v60 = vpop.f32.mrb[20].mxu1  ;;  %4539 = vmatpush3.bf16.msra.mxu0 %v4847_v41 }
 0x76b   :  { %v1410_v61 = vpop.f32.mrb[21].mxu1  ;;  %4562 = vmatprep.subr.bf16.mxu0 %v4848_v2 }
 0x76c   :  { %v4525_v62 = vpop.f32.mrb[22].mxu1 }
 0x76d   :  { %v1428_v63 = vpack.c.bf16 %v4525_v62, %v4524_v60  ;;  %v1413_v0 = vpop.f32.mrb[23].mxu1 }
 0x76e   :  { %v1427_v1 = vpack.c.bf16 %v1413_v0, %v1410_v61 }
 0x770   :  { %4540 = vmatprep.mubr.msk.bf16.mxu0 %vm44_vm0, %v1427_v1  ;;  %4558 = vmatprep.mubr.msk.bf16.mxu1 %vm44_vm0, %v1427_v1  ;;  %v4849_v1 = vld [vmem:[%s5988_s1 + $0xb8] sm:$0xff]  }
 0x771   :  { %4580 = vmatprep.subr.bf16.mxu1 %v4849_v1 }
 0x775   :  { %4541 = vmatmul.mubr.msk.bf16.vlgmr.msra.gmra.mrb[28].mxu0 %vm44_vm0, %v1428_v63  ;;  %4559 = vmatmul.mubr.msk.bf16.vlgmr.msra.gmra.mrb[24].mxu1 %vm44_vm0, %v1428_v63 }
 0x776   :  { %4563 = vmatpush3.bf16.msra.mxu0 %v4848_v2  ;;  %4581 = vmatpush3.bf16.msra.mxu1 %v4849_v1  ;;  %v4047_v2 = vld [vmem:[%s5991_s3 + $0x120] sm:$0xff] }
 0x848   :  { %v4542_v11 = vpop.f32.mrb[28].mxu0  ;;  %v4560_v33 = vpop.f32.mrb[24].mxu1 }
 0x849   :  { %v1819_v13 = vadd.f32 %v4560_v33, %v4039_v5  ;;  %v1606_v14 = vpop.f32.mrb[29].mxu0  ;;  %v1793_v15 = vpop.f32.mrb[25].mxu1  ;;  %v1632_v30 = vadd.f32 %v4542_v11, %v4020_v28  ;;  %v4049_v5 = vld [vmem:[%s5991_s3 + $0x130] sm:$0xff]  ;;  %v4050_v11 = vld [vmem:[%s5991_s3 + $0x138] sm:$0xff]  ;;  %v4048_v33 = vld [vmem:[%s5991_s3 + $0x128] sm:$0xff] }
 0x84a   :  { %v1817_v17 = vadd.f32 %v4037_v10, %v1793_v15  ;;  %v4543_v18 = vpop.f32.mrb[30].mxu0  ;;  %v4561_v19 = vpop.f32.mrb[26].mxu1  ;;  %v1630_v31 = vadd.f32 %v4018_v29, %v1606_v14 }
 0x84b   :  { %v4043_v20 = vmul.f32 -1.442695, %v1819_v13  ;;  %v1820_v21 = vadd.f32 %v4561_v19, %v4040_v36  ;;  %v1609_v22 = vpop.f32.mrb[31].mxu0  ;;  %v1796_v23 = vpop.f32.mrb[27].mxu1  ;;  %v1633_v40 = vadd.f32 %v4543_v18, %v4021_v3 }
 0x84c   :  { %v4041_v24 = vmul.f32 -1.442695, %v1817_v17  ;;  %v1818_v25 = vadd.f32 %v4038_v16, %v1796_v23  ;;  %v1631_v49 = vadd.f32 %v4019_v37, %v1609_v22 }
 0x84d   :  { %4934 = vpow2.f32 %v4043_v20  ;;  %v4044_v26 = vmul.f32 -1.442695, %v1820_v21 }
 0x84e   :  { %4936 = vpow2.f32 %v4041_v24  ;;  %v4042_v27 = vmul.f32 -1.442695, %v1818_v25  ;;  %v4850_v24 = vld [vmem:[%s5988_s1 + $0xd0] sm:$0xff]   ;;  %v4851_v25 = vld [vmem:[%s5988_s1 + $0xc8] sm:$0xff]  }
 0x84f   :  { %4938 = vpow2.f32 %v4044_v26  ;;  %v4852_v26 = vld [vmem:[%s5988_s1 + $0xb0] sm:$0xff]  }
 0x850   :  { %4940 = vpow2.f32 %v4042_v27  ;;  %4586 = vmatprep.subr.bf16.mxu1 %v4852_v26 }
 0x851   :  { %4942 = vtanh.f32 %v1632_v30 }
 0x852   :  { %4944 = vtanh.f32 %v1630_v31 }
 0x857   :  { %v4935_v32 = vpop.eup %4934 }
 0x858   :  { %v4937_v38 = vpop.eup %4936  ;;  %v1839_v39 = vadd.f32 1.0, %v4935_v32 }
 0x859   :  { %v1837_v43 = vadd.f32 1.0, %v4937_v38  ;;  %v4939_v44 = vpop.eup %4938 }
 0x85a   :  { %4946 = vrcp.f32 %v1839_v39  ;;  %v1840_v50 = vadd.f32 1.0, %v4939_v44  ;;  %v4941_v51 = vpop.eup %4940  ;;  %v4094_v44 = vld [vmem:[%s5991_s3 + $0x170] sm:$0xff] }
 0x85b   :  { %4948 = vrcp.f32 %v1837_v43  ;;  %v1838_v52 = vadd.f32 1.0, %v4941_v51  ;;  %v4943_v53 = vpop.eup %4942  ;;  %v4855_v43 = vld [vmem:[%s5988_s1 + $0xe0] sm:$0xff]  }
 0x85c   :  { %4950 = vtanh.f32 %v1633_v40  ;;  %v4945_v4 = vpop.eup %4944 }
 0x85d   :  { %4952 = vrcp.f32 %v1840_v50 }
 0x85e   :  { %4954 = vtanh.f32 %v1631_v49  ;;  %v4092_v49 = vld [vmem:[%s5991_s3 + $0x160] sm:$0xff] }
 0x85f   :  { %4956 = vrcp.f32 %v1838_v52  ;;  %v4095_v52 = vld [vmem:[%s5991_s3 + $0x178] sm:$0xff] }
 0x864   :  { %v4947_v41 = vpop.eup %4946 }
 0x865   :  { %v4949_v42 = vpop.eup %4948  ;;  %v1851_v54 = vmul.f32 %v4947_v41, %v4943_v53 }
 0x866   :  { %v4951_v56 = vpop.eup %4950  ;;  %v1849_v57 = vmul.f32 %v4949_v42, %v4945_v4  ;;  %v4093_v42 = vld [vmem:[%s5991_s3 + $0x168] sm:$0xff] }
 0x867   :  { %v4953_v58 = vpop.eup %4952 }
 0x868   :  { %v4955_v59 = vpop.eup %4954  ;;  %v1852_v60 = vmul.f32 %v4953_v58, %v4951_v56 }
 0x869   :  { %v4957_v61 = vpop.eup %4956 }
 0x86a   :  { %v1850_v62 = vmul.f32 %v4957_v61, %v4955_v59  ;;  %v1854_v63 = vpack.c.bf16 %v1852_v60, %v1851_v54 }
 0x86c   :  { %v1853_v0 = vpack.c.bf16 %v1850_v62, %v1849_v57 }
 0x86e   :  { %4564 = vmatprep.mubr.msk.bf16.mxu0 %vm44_vm0, %v1853_v0 }
 0x86f   :  { %4565 = vmatmul.mubr.msk.bf16.vlgmr.msra.gmra.mrb[32].mxu0 %vm44_vm0, %v1854_v63 }
 0x870   :  { %4572 = vmatprep.mubr.msk.bf16.mxu0 %vm158_vm1, %v5266_v55 }
 0x942   :  { %v4566_v10 = vpop.f32.mrb[32].mxu0 }
 0x943   :  { %v1909_v55 = vpop.f32.mrb[33].mxu0  ;;  %v1918_v14 = vadd.f32 %v4566_v10, %v4049_v5  ;;  %v4073_v5 = vld [vmem:[%s5991_s3 + $0x140] sm:$0xff] }
 0x944   :  { %v1910_v36 = vadd.f32 %v4047_v2, %v1909_v55  ;;  %v4567_v13 = vpop.f32.mrb[34].mxu0  ;;  %v4075_v2 = vld [vmem:[%s5991_s3 + $0x150] sm:$0xff]  ;;  %v4076_v55 = vld [vmem:[%s5991_s3 + $0x158] sm:$0xff] }
 0x945   :  { %v1921_v15 = vadd.f32 %v4567_v13, %v4050_v11  ;;  %v1912_v16 = vpop.f32.mrb[35].mxu0  ;;  %v5497_v21 = vadd.f32 %v1918_v14, %v5402_v48 }
 0x946   :  { %v1913_v17 = vadd.f32 %v4048_v33, %v1912_v16  ;;  %v5491_v19 = vadd.f32 %v1910_v36, %v5396_v46  ;;  %v4074_v36 = vld [vmem:[%s5991_s3 + $0x148] sm:$0xff] }
 0x947   :  { %v5488_v18 = vadd.f32 %v1921_v15, %v5393_v45 }
 0x948   :  { %v5494_v20 = vadd.f32 %v1913_v17, %v5399_v47 }
 0x949   :  { %v1933_v23 = vpack.c.bf16 %v5488_v18, %v5497_v21 }
 0x94a   :  { %v1932_v22 = vpack.c.bf16 %v5494_v20, %v5491_v19 }
 0x94c   :  { %4568 = vmatprep.subr.bf16.mxu0 %v1932_v22  ;;  %4582 = vmatprep.mubr.msk.bf16.mxu1 %vm44_vm0, %v1932_v22 }
 0x94d   :  { %4569 = vmatpush3.bf16.msra.mxu0 %v1932_v22  ;;  %4583 = vmatmul.mubr.msk.bf16.vlgmr.msra.gmra.mrb[28].mxu1 %vm44_vm0, %v1933_v23 }
 0x94e   :  { %4570 = vmatprep.subr.bf16.mxu0 %v1933_v23  ;;  %4587 = vmatpush3.bf16.msra.mxu1 %v4852_v26 }
 0x951   :  { %4571 = vmatpush3.bf16.msra.mxu0 %v1933_v23 }
 0x952   :  { %4598 = vmatprep.subr.bf16.mxu0 %v4850_v24 }
 0x954   :  { %4573 = vmatmul.mubr.msk.bf16.vlgmr.msra.gmra.mrb[36].mxu0 %vm158_vm1, %v5306_v34  ;;  %v4853_v34 = vld [vmem:[%s5988_s1 + $0xd8] sm:$0xff]  }
 0x955   :  { %4576 = vmatprep.mubr.msk.bf16.mxu0 %vm158_vm1, %v5311_v35  ;;  %4599 = vmatpush3.bf16.msra.mxu0 %v4850_v24  ;;  %v4854_v35 = vld [vmem:[%s5988_s1 + $0xc0] sm:$0xff]  }
 0x956   :  { %4604 = vmatprep.subr.bf16.mxu0 %v4851_v25  ;;  %4592 = vmatprep.subr.bf16.mxu1 %v4854_v35 }
 0x95c   :  { %4577 = vmatmul.mubr.msk.bf16.gmra.mrb[40].mxu0 %vm158_vm1, %v5323_v12 }
 0x95d   :  { %4600 = vmatprep.mubr.msk.bf16.mxu0 %vm44_vm0, %v1932_v22 }
 0x964   :  { %4601 = vmatmul.mubr.msk.bf16.vlgmr.msra.gmra.mrb[44].mxu0 %vm44_vm0, %v1933_v23 }
 0x965   :  { %4605 = vmatpush3.bf16.msra.mxu0 %v4851_v25 }
 0x966   :  { %4610 = vmatprep.subr.bf16.mxu0 %v4853_v34 }
 0xa27   :  { %v4574_v12 = vpop.f32.mrb[36].mxu0 }
 0xa28   :  { %v1968_v27 = vpop.f32.mrb[37].mxu0 }
 0xa29   :  { %v4575_v28 = vpop.f32.mrb[38].mxu0 }
 0xa2a   :  { %v2000_v29 = vpack.c.bf16 %v4575_v28, %v4574_v12  ;;  %v1971_v30 = vpop.f32.mrb[39].mxu0 }
 0xa2b   :  { %v1999_v31 = vpack.c.bf16 %v1971_v30, %v1968_v27 }
 0xa2d   :  { %4588 = vmatprep.mubr.msk.bf16.mxu1 %vm44_vm0, %v1999_v31  ;;  %4606 = vmatprep.mubr.msk.bf16.mxu0 %vm44_vm0, %v1999_v31 }
 0xa2e   :  { %4589 = vmatmul.mubr.msk.bf16.vlgmr.msra.gmra.mrb[28].mxu1 %vm44_vm0, %v2000_v29  ;;  %4607 = vmatmul.mubr.msk.bf16.vlgmr.msra.gmra.mrb[44].mxu0 %vm44_vm0, %v2000_v29 }
 0xa2f   :  { %4611 = vmatpush3.bf16.msra.mxu0 %v4853_v34  ;;  %v4578_v3 = vpop.f32.mrb[40].mxu0  ;;  %4593 = vmatpush3.bf16.msra.mxu1 %v4854_v35 }
 0xa30   :  { %v1984_v32 = vpop.f32.mrb[41].mxu0  ;;  %4616 = vmatprep.subr.bf16.mxu1 %v4855_v43 }
 0xa31   :  { %v4579_v37 = vpop.f32.mrb[42].mxu0 }
 0xa32   :  { %v2002_v38 = vpack.c.bf16 %v4579_v37, %v4578_v3  ;;  %v1987_v39 = vpop.f32.mrb[43].mxu0 }
 0xa33   :  { %v2001_v40 = vpack.c.bf16 %v1987_v39, %v1984_v32 }
 0xa35   :  { %4594 = vmatprep.mubr.msk.bf16.mxu1 %vm44_vm0, %v2001_v40  ;;  %4612 = vmatprep.mubr.msk.bf16.mxu0 %vm44_vm0, %v2001_v40  ;;  %v4856_v40 = vld [vmem:[%s5988_s1 + $0xe8] sm:$0xff]  }
 0xa3a   :  { %4595 = vmatmul.mubr.msk.bf16.vlgmr.msra.gmra.mrb[28].mxu1 %vm44_vm0, %v2002_v38  ;;  %4613 = vmatmul.mubr.msk.bf16.vlgmr.msra.gmra.mrb[44].mxu0 %vm44_vm0, %v2002_v38 }
 0xa3b   :  { %4617 = vmatpush3.bf16.msra.mxu1 %v4855_v43  ;;  %v4857_v43 = vld [vmem:[%s5988_s1 + $0xf0] sm:$0xff]  }
 0xa3c   :  { %4622 = vmatprep.subr.bf16.mxu1 %v4856_v40  ;;  %4628 = vmatprep.subr.bf16.mxu0 %v4857_v43 }
 0xa3d   :  { %4629 = vmatpush3.bf16.msra.mxu0 %v4857_v43  ;;  %v4111_v43 = vld [vmem:[%s5991_s3 + $0x1a0] sm:$0xff] }
 0xb0d   :  { %v4596_v50 = vpop.f32.mrb[28].mxu1  ;;  %v4614_v51 = vpop.f32.mrb[44].mxu0 }
 0xb0e   :  { %v2393_v53 = vadd.f32 %v4614_v51, %v4094_v44  ;;  %v2180_v4 = vpop.f32.mrb[29].mxu1  ;;  %v2367_v41 = vpop.f32.mrb[45].mxu0  ;;  %v2206_v10 = vadd.f32 %v4596_v50, %v4075_v2  ;;  %v4858_v44 = vld [vmem:[%s5988_s1 + $0xf8] sm:$0xff]   ;;  %v4104_v50 = vld [vmem:[%s5991_s3 + $0x190] sm:$0xff]  ;;  %v4102_v51 = vld [vmem:[%s5991_s3 + $0x180] sm:$0xff] }
 0xb0f   :  { %v2391_v54 = vadd.f32 %v4092_v49, %v2367_v41  ;;  %v4597_v56 = vpop.f32.mrb[30].mxu1  ;;  %v4615_v57 = vpop.f32.mrb[46].mxu0  ;;  %v2204_v11 = vadd.f32 %v4073_v5, %v2180_v4  ;;  %v4859_v49 = vld [vmem:[%s5988_s1 + $0x100] sm:$0xff]  }
 0xb10   :  { %v4098_v58 = vmul.f32 -1.442695, %v2393_v53  ;;  %v2394_v59 = vadd.f32 %v4615_v57, %v4095_v52  ;;  %v2183_v60 = vpop.f32.mrb[31].mxu1  ;;  %v2370_v61 = vpop.f32.mrb[47].mxu0  ;;  %v2207_v15 = vadd.f32 %v4597_v56, %v4076_v55  ;;  %4640 = vmatprep.subr.bf16.mxu0 %v4859_v49  ;;  %v4105_v53 = vld [vmem:[%s5991_s3 + $0x198] sm:$0xff]  ;;  %v1356_v57 = vadd.f32 %v5402_v48, %v5292_v9  ;;  %v4863_v55 = vld [vmem:[%s5988_s1 + $0x120] sm:$0xff]  }
 0xb11   :  { %v4096_v62 = vmul.f32 -1.442695, %v2391_v54  ;;  %v2392_v63 = vadd.f32 %v4093_v42, %v2370_v61  ;;  %v2205_v22 = vadd.f32 %v4074_v36, %v2183_v60  ;;  %v4103_v42 = vld [vmem:[%s5991_s3 + $0x188] sm:$0xff]  ;;  %v5112_v36 = vmov 0  }
 0xb12   :  { %4958 = vpow2.f32 %v4098_v58  ;;  %v4099_v0 = vmul.f32 -1.442695, %v2394_v59  ;;  %v1357_v58 = vadd.f32 %v5393_v45, %v5283_v6  ;;  %v1930_v2 = vadd.f32 %v5497_v21, %v1356_v57 }
 0xb13   :  { %4960 = vpow2.f32 %v4096_v62  ;;  %v4097_v1 = vmul.f32 -1.442695, %v2392_v63  ;;  %v1354_v62 = vadd.f32 %v5396_v46, %v5286_v7  ;;  %v1355_v63 = vadd.f32 %v5399_v47, %v5289_v8 }
 0xb14   :  { %4962 = vpow2.f32 %v4099_v0  ;;  %v1931_v9 = vadd.f32 %v5488_v18, %v1357_v58 }
 0xb15   :  { %4964 = vpow2.f32 %v4097_v1  ;;  %v1928_v6 = vadd.f32 %v5491_v19, %v1354_v62  ;;  %v1929_v45 = vadd.f32 %v5494_v20, %v1355_v63 }
 0xb16   :  { %4966 = vtanh.f32 %v2206_v10 }
 0xb17   :  { %4968 = vtanh.f32 %v2204_v11 }
 0xb1c   :  { %v4959_v33 = vpop.eup %4958 }
 0xb1d   :  { %v4961_v13 = vpop.eup %4960  ;;  %v2413_v14 = vadd.f32 1.0, %v4959_v33  ;;  %v5640_v33 = vld [vmem:[%s5988_s1 + $0x128] sm:$0xff]  }
 0xb1e   :  { %v2411_v16 = vadd.f32 1.0, %v4961_v13  ;;  %v4963_v17 = vpop.eup %4962 }
 0xb1f   :  { %4970 = vrcp.f32 %v2413_v14  ;;  %v2414_v23 = vadd.f32 1.0, %v4963_v17  ;;  %v4965_v24 = vpop.eup %4964 }
 0xb20   :  { %4972 = vrcp.f32 %v2411_v16  ;;  %v2412_v25 = vadd.f32 1.0, %v4965_v24  ;;  %v4967_v26 = vpop.eup %4966 }
 0xb21   :  { %4974 = vtanh.f32 %v2207_v15  ;;  %v4969_v34 = vpop.eup %4968 }
 0xb22   :  { %4976 = vrcp.f32 %v2414_v23 }
 0xb23   :  { %4978 = vtanh.f32 %v2205_v22 }
 0xb24   :  { %4980 = vrcp.f32 %v2412_v25 }
 0xb29   :  { %v4971_v35 = vpop.eup %4970 }
 0xb2a   :  { %v4973_v12 = vpop.eup %4972  ;;  %v2425_v27 = vmul.f32 %v4971_v35, %v4967_v26 }
 0xb2b   :  { %v4975_v28 = vpop.eup %4974  ;;  %v2423_v29 = vmul.f32 %v4973_v12, %v4969_v34 }
 0xb2c   :  { %v4977_v30 = vpop.eup %4976 }
 0xb2d   :  { %v4979_v31 = vpop.eup %4978  ;;  %v2426_v3 = vmul.f32 %v4977_v30, %v4975_v28 }
 0xb2e   :  { %v4981_v32 = vpop.eup %4980 }
 0xb2f   :  { %v2424_v37 = vmul.f32 %v4981_v32, %v4979_v31  ;;  %v2428_v38 = vpack.c.bf16 %v2426_v3, %v2425_v27 }
 0xb31   :  { %v2427_v39 = vpack.c.bf16 %v2424_v37, %v2423_v29 }
 0xb33   :  { %4618 = vmatprep.mubr.msk.bf16.mxu1 %vm44_vm0, %v2427_v39 }
 0xb34   :  { %4619 = vmatmul.mubr.msk.bf16.vlgmr.msra.gmra.mrb[32].mxu1 %vm44_vm0, %v2428_v38 }
 0xb35   :  { %4623 = vmatpush3.bf16.msra.mxu1 %v4856_v40 }
 0xb36   :  { %4634 = vmatprep.subr.bf16.mxu1 %v4858_v44 }
 0xc07   :  { %v4620_v52 = vpop.f32.mrb[32].mxu1 }
 0xc08   :  { %v2492_v4 = vadd.f32 %v4620_v52, %v4104_v50  ;;  %v2483_v41 = vpop.f32.mrb[33].mxu1  ;;  %v5709_v50 = vld [vmem:[%s5991_s3 + $0x280] sm:$0xff]  ;;  %v4121_v52 = vld [vmem:[%s5991_s3 + $0x1c8] sm:$0xff] }
 0xc09   :  { %v2484_v54 = vadd.f32 %v4102_v51, %v2483_v41  ;;  %v4621_v56 = vpop.f32.mrb[34].mxu1  ;;  %v4112_v51 = vld [vmem:[%s5991_s3 + $0x1a8] sm:$0xff] }
 0xc0a   :  { %v2500_v59 = vadd.f32 %v2492_v4, %v5497_v21  ;;  %v2495_v60 = vadd.f32 %v4621_v56, %v4105_v53  ;;  %v2486_v61 = vpop.f32.mrb[35].mxu1  ;;  %v4862_v21 = vld [vmem:[%s5988_s1 + $0x118] sm:$0xff]   ;;  %v5720_v41 = vld [vmem:[%s5991_s3 + $0x268] sm:$0xff] }
 0xc0b   :  { %v2498_v0 = vadd.f32 %v2484_v54, %v5491_v19  ;;  %v2487_v1 = vadd.f32 %v4103_v42, %v2486_v61  ;;  %v4861_v19 = vld [vmem:[%s5988_s1 + $0x110] sm:$0xff]   ;;  %v5725_v42 = vld [vmem:[%s5991_s3 + $0x288] sm:$0xff] }
 0xc0c   :  { %v2501_v48 = vadd.f32 %v2495_v60, %v5488_v18  ;;  %v2504_v10 = vadd.f32 %v2500_v59, %v1930_v2  ;;  %v4860_v18 = vld [vmem:[%s5988_s1 + $0x108] sm:$0xff]  }
 0xc0d   :  { %v2499_v5 = vadd.f32 %v2487_v1, %v5494_v20  ;;  %v2502_v46 = vadd.f32 %v2498_v0, %v1928_v6  ;;  %v5110_v20 = vmov 0.0  }
 0xc0e   :  { %v2505_v7 = vadd.f32 %v2501_v48, %v1931_v9 }
 0xc0f   :  { %v2503_v11 = vadd.f32 %v2499_v5, %v1929_v45 }
 0xc10   :  { %v2507_v8 = vpack.c.bf16 %v2505_v7, %v2504_v10 }
 0xc11   :  { %v2506_v47 = vpack.c.bf16 %v2503_v11, %v2502_v46 }
 0xc13   :  { %4624 = vmatprep.mubr.msk.bf16.mxu1 %vm44_vm0, %v2506_v47  ;;  %4630 = vmatprep.mubr.msk.bf16.mxu0 %vm44_vm0, %v2506_v47 }
 0xc14   :  { %4625 = vmatmul.mubr.msk.bf16.vlgmr.msra.gmra.mrb[36].mxu1 %vm44_vm0, %v2507_v8  ;;  %4631 = vmatmul.mubr.msk.bf16.vlgmr.msra.gmra.mrb[48].mxu0 %vm44_vm0, %v2507_v8 }
 0xc15   :  { %4635 = vmatpush3.bf16.msra.mxu1 %v4858_v44  ;;  %4636 = vmatprep.mubr.msk.bf16.mxu1 %vm44_vm0, %v2506_v47  ;;  %v4120_v44 = vld [vmem:[%s5991_s3 + $0x1c0] sm:$0xff] }
 0xc16   :  { %4642 = vmatprep.mubr.msk.bf16.mxu0 %vm44_vm0, %v2506_v47  ;;  %4641 = vmatpush3.bf16.msra.mxu0 %v4859_v49  ;;  %v5704_v49 = vld [vmem:[%s5991_s3 + $0x260] sm:$0xff] }
 0xc17   :  { %4646 = vmatprep.subr.bf16.mxu1 %v4860_v18  ;;  %4652 = vmatprep.subr.bf16.mxu0 %v4861_v19 }
 0xc1c   :  { %4637 = vmatmul.mubr.msk.bf16.vlgmr.msra.gmra.mrb[40].mxu1 %vm44_vm0, %v2507_v8  ;;  %4643 = vmatmul.mubr.msk.bf16.vlgmr.msra.gmra.mrb[52].mxu0 %vm44_vm0, %v2507_v8 }
 0xc1d   :  { %4647 = vmatpush3.bf16.msra.mxu1 %v4860_v18  ;;  %4648 = vmatprep.mubr.msk.bf16.mxu1 %vm44_vm0, %v2506_v47 }
 0xc1e   :  { %4654 = vmatprep.mubr.msk.bf16.mxu0 %vm44_vm0, %v2506_v47  ;;  %4653 = vmatpush3.bf16.msra.mxu0 %v4861_v19 }
 0xc1f   :  { %4658 = vmatprep.subr.bf16.mxu1 %v5110_v20  ;;  %4664 = vmatprep.subr.bf16.mxu0 %v5110_v20 }
 0xc24   :  { %4649 = vmatmul.mubr.msk.bf16.vlgmr.msra.gmra.mrb[44].mxu1 %vm44_vm0, %v2507_v8  ;;  %4655 = vmatmul.mubr.msk.bf16.vlgmr.msra.gmra.mrb[56].mxu0 %vm44_vm0, %v2507_v8 }
 0xc25   :  { %4659 = vmatpush3.bf16.msra.mxu1 %v4862_v21  ;;  %4665 = vmatpush3.bf16.msra.mxu0 %v4863_v55 }
 0xc26   :  { %4660 = vmatprep.mubr.msk.bf16.mxu1 %vm5111_vm2, %v5110_v20  ;;  %4666 = vmatprep.mubr.msk.bf16.mxu0 %vm5111_vm2, %v5110_v20 }
 0xc27   :  { %4670 = vmatprep.subr.bf16.mxu1 %v5110_v20  ;;  %4676 = vmatprep.subr.bf16.mxu0 %v5110_v20 }
 0xc2c   :  { %4661 = vmatmul.mubr.bf16.vlgmr.msra.gmra.mrb[48].mxu1 %v5112_v36  ;;  %4667 = vmatmul.mubr.bf16.vlgmr.msra.gmra.mrb[60].mxu0 %v5112_v36 }
 0xc2d   :  { %4671 = vmatpush3.bf16.msra.mxu1 %v5640_v33  ;;  %4672 = vmatprep.mubr.msk.bf16.mxu1 %vm5111_vm2, %v5110_v20 }
 0xc2e   :  { %4682 = vmatprep.subr.bf16.mxu1 %v5110_v20  ;;  %4677 = vmatpush3.bf16.msra.mxu0 %v4862_v21 }
 0xc2f   :  { %4678 = vmatprep.mubr.msk.bf16.mxu0 %vm5111_vm2, %v5110_v20  ;;  %4688 = vmatprep.subr.bf16.mxu0 %v5110_v20 }
 0xc34   :  { %4673 = vmatmul.mubr.bf16.vlgmr.msra.gmra.mrb[52].mxu1 %v5112_v36 }
 0xc35   :  { %4683 = vmatpush3.bf16.msra.mxu1 %v4863_v55  ;;  %4684 = vmatprep.mubr.msk.bf16.mxu1 %vm5111_vm2, %v5110_v20 }
 0xc36   :  { %4694 = vmatprep.subr.bf16.mxu1 %v5110_v20 }
 0xce7   :  { %v5655_v13 = vpop.f32.mrb[36].mxu1  ;;  %v5657_v14 = vpop.f32.mrb[48].mxu0 }
 0xce8   :  { %v2562_v15 = vpop.f32.mrb[37].mxu1  ;;  %v2625_v16 = vpop.f32.mrb[49].mxu0 }
 0xce9   :  { %v5659_v17 = vpop.f32.mrb[38].mxu1  ;;  %v5661_v22 = vpop.f32.mrb[50].mxu0  ;;  %v2563_v54 = vadd.f32 %v4111_v43, %v2562_v15  ;;  %v2626_v56 = vadd.f32 %v4120_v44, %v2625_v16  ;;  %v5734_v43 = vld [vmem:[%s5991_s3 + $0x2a0] sm:$0xff] }
 0xcea   :  { %v2565_v23 = vpop.f32.mrb[39].mxu1  ;;  %v2628_v24 = vpop.f32.mrb[51].mxu0 }
 0xceb   :  { %v2566_v61 = vadd.f32 %v4112_v51, %v2565_v23  ;;  %v2629_v62 = vadd.f32 %v4121_v52, %v2628_v24 }
 0xcef   :  { %v5663_v25 = vpop.f32.mrb[40].mxu1  ;;  %v5665_v26 = vpop.f32.mrb[52].mxu0 }
 0xcf0   :  { %v5667_v34 = vpop.f32.mrb[41].mxu1  ;;  %v5669_v35 = vpop.f32.mrb[53].mxu0 }
 0xcf1   :  { %v5671_v12 = vpop.f32.mrb[42].mxu1  ;;  %v5673_v27 = vpop.f32.mrb[54].mxu0 }
 0xcf2   :  { %v5675_v28 = vpop.f32.mrb[43].mxu1  ;;  %v5677_v29 = vpop.f32.mrb[55].mxu0 }
 0xcf7   :  { %v5679_v30 = vpop.f32.mrb[44].mxu1  ;;  %v5681_v31 = vpop.f32.mrb[56].mxu0 }
 0xcf8   :  { %v5683_v3 = vpop.f32.mrb[45].mxu1  ;;  %v5685_v32 = vpop.f32.mrb[57].mxu0 }
 0xcf9   :  { %v5687_v37 = vpop.f32.mrb[46].mxu1  ;;  %v5689_v38 = vpop.f32.mrb[58].mxu0 }
 0xcfa   :  { %v5691_v39 = vpop.f32.mrb[47].mxu1  ;;  %v5693_v40 = vpop.f32.mrb[59].mxu0 }
 0xcff   :  { %v2941_v53 = vpop.f32.mrb[48].mxu1  ;;  %v2994_v4 = vpop.f32.mrb[60].mxu0 }
 0xd00   :  { %v2942_v57 = vadd.f32 %v5704_v49, %v2941_v53  ;;  %v2995_v58 = vadd.f32 %v5709_v50, %v2994_v4  ;;  %v4662_v59 = vpop.f32.mrb[49].mxu1  ;;  %v4668_v60 = vpop.f32.mrb[61].mxu0  ;;  %v4129_v53 = vld [vmem:[%s5991_s3 + $0x1e0] sm:$0xff]  ;;  %v5743_v4 = vld [vmem:[%s5991_s3 + $0x2a8] sm:$0xff] }
 0xd01   :  { %v2944_v63 = vpop.f32.mrb[50].mxu1  ;;  %v2997_v0 = vpop.f32.mrb[62].mxu0 }
 0xd02   :  { %v3054_v1 = vadd.f32 %v2942_v57, %v2563_v54  ;;  %v3068_v2 = vadd.f32 %v2995_v58, %v2626_v56  ;;  %v2945_v9 = vadd.f32 %v5720_v41, %v2944_v63  ;;  %v2998_v48 = vadd.f32 %v5725_v42, %v2997_v0  ;;  %v4663_v6 = vpop.f32.mrb[51].mxu1  ;;  %v4669_v45 = vpop.f32.mrb[63].mxu0  ;;  %v4130_v57 = vld [vmem:[%s5991_s3 + $0x1e8] sm:$0xff] }
 0xd03   :  { %v2689_v58 = vadd.f32 %v4129_v53, %v5667_v34 }
 0xd04   :  { %v4178_v5 = vmul.f32 -1.442695, %v3054_v1  ;;  %v3055_v10 = vadd.f32 %v2945_v9, %v2566_v61  ;;  %v3069_v7 = vadd.f32 %v2998_v48, %v2629_v62  ;;  %v4180_v47 = vmul.f32 -1.442695, %v3068_v2 }
 0xd05   :  { %v2692_v62 = vadd.f32 %v4130_v57, %v5675_v28  ;;  %v4865_v28 = vld [vmem:[%s5988_s1 + $0x130] sm:$0xff]  }
 0xd06   :  { %4982 = vpow2.f32 %v4178_v5  ;;  %v4179_v46 = vmul.f32 -1.442695, %v3055_v10  ;;  %v4181_v21 = vmul.f32 -1.442695, %v3069_v7 }
 0xd07   :  { %v3047_v11 = vpop.f32.mrb[52].mxu1 }
 0xd08   :  { %4984 = vpow2.f32 %v4179_v46  ;;  %v4674_v8 = vpop.f32.mrb[53].mxu1  ;;  %v3048_v52 = vadd.f32 %v5734_v43, %v3047_v11 }
 0xd09   :  { %v3050_v18 = vpop.f32.mrb[54].mxu1  ;;  %4986 = vpow2.f32 %v4180_v47 }
 0xd0a   :  { %v4675_v19 = vpop.f32.mrb[55].mxu1  ;;  %4988 = vpow2.f32 %v4181_v21  ;;  %v3051_v60 = vadd.f32 %v5743_v4, %v3050_v18  ;;  %v4866_v18 = vld [vmem:[%s5988_s1 + $0x138] sm:$0xff]   ;;  %v4122_v21 = vld [vmem:[%s5991_s3 + $0x1d0] sm:$0xff] }
 0xd0b   :  { %v5775_v19 = vld [vmem:[%s5988_s1 + $0x140] sm:$0xff]  }
 0xd10   :  { %v4983_v55 = vpop.eup %4982 }
 0xd11   :  { %v3062_v15 = vadd.f32 1.0, %v4983_v55  ;;  %v4123_v55 = vld [vmem:[%s5991_s3 + $0x1d8] sm:$0xff] }
 0xd12   :  { %v4985_v16 = vpop.eup %4984 }
 0xd13   :  { %4990 = vrcp.f32 %v3062_v15  ;;  %v3063_v23 = vadd.f32 1.0, %v4985_v16  ;;  %v4987_v24 = vpop.eup %4986 }
 0xd14   :  { %v4989_v44 = vpop.eup %4988  ;;  %v3076_v51 = vadd.f32 1.0, %v4987_v24  ;;  %v2634_v24 = vadd.f32 %v5657_v14, %v4122_v21 }
 0xd15   :  { %4992 = vrcp.f32 %v3063_v23  ;;  %v3077_v54 = vadd.f32 1.0, %v4989_v44 }
 0xd16   :  { %4994 = vrcp.f32 %v3076_v51 }
 0xd17   :  { %4996 = vrcp.f32 %v3077_v54 }
 0xd1d   :  { %v4991_v56 = vpop.eup %4990 }
 0xd1e   :  { %v3082_v59 = vmul.f32 %v4991_v56, %v3048_v52  ;;  %v2637_v56 = vadd.f32 %v5661_v22, %v4123_v55  ;;  %v5839_v55 = vld [vmem:[%s5991_s3 + $0x2e0] sm:$0xff] }
 0xd1f   :  { %v4993_v61 = vpop.eup %4992 }
 0xd20   :  { %v3084_v63 = vadd.f32 %v3082_v59, %v2689_v58  ;;  %v3083_v0 = vmul.f32 %v4993_v61, %v3051_v60  ;;  %v4995_v2 = vpop.eup %4994 }
 0xd21   :  { %v4997_v9 = vpop.eup %4996  ;;  %v3088_v48 = vsub.f32 1.0, %v4995_v2  ;;  %v3092_v45 = vmul.f32 0.0, %v4995_v2  ;;  %v5827_v2 = vld [vmem:[%s5991_s3 + $0x2c8] sm:$0xff] }
 0xd22   :  { %4998 = vtanh.f32 %v3084_v63  ;;  %v3085_v1 = vadd.f32 %v3083_v0, %v2692_v62  ;;  %v3089_v5 = vsub.f32 1.0, %v4997_v9  ;;  %v3093_v7 = vmul.f32 0.0, %v4997_v9 }
 0xd24   :  { %5000 = vtanh.f32 %v3085_v1 }
 0xd2c   :  { %v4999_v6 = vpop.eup %4998 }
 0xd2d   :  { %v3090_v34 = vmul.f32 %v4999_v6, %v3088_v48 }
 0xd2e   :  { %v5001_v10 = vpop.eup %5000 }
 0xd2f   :  { %v5751_v46 = vadd.f32 %v3092_v45, %v3090_v34  ;;  %v3091_v11 = vmul.f32 %v5001_v10, %v3089_v5 }
 0xd31   :  { %v5753_v8 = vadd.f32 %v3093_v7, %v3091_v11 }
 0xd33   :  { %v3096_v47 = vpack.c.bf16 %v5753_v8, %v5751_v46 }
 0xd35   :  { %4679 = vmatmul.mubr.msk.bf16.vlgmr.msra.gmra.mrb[64].mxu0 %vm44_vm0, %v3096_v47  ;;  %4685 = vmatmul.mubr.msk.bf16.vlgmr.msra.gmra.mrb[56].mxu1 %vm44_vm0, %v3096_v47 }
 0xd36   :  { %4695 = vmatpush3.bf16.msra.mxu1 %v4865_v28  ;;  %4689 = vmatpush3.bf16.msra.mxu0 %v5640_v33  ;;  %v4113_v33 = vld [vmem:[%s5991_s3 + $0x1b0] sm:$0xff] }
 0xd37   :  { %4690 = vmatprep.mubr.msk.bf16.mxu0 %vm5111_vm2, %v5110_v20  ;;  %4696 = vmatprep.mubr.msk.bf16.mxu1 %vm5111_vm2, %v5110_v20  ;;  %v2571_v23 = vadd.f32 %v5655_v13, %v4113_v33 }
 0xd38   :  { %4700 = vmatprep.subr.bf16.mxu0 %v5110_v20  ;;  %4706 = vmatprep.subr.bf16.mxu1 %v5110_v20 }
 0xd3d   :  { %4691 = vmatmul.mubr.msk.bf16.vlgmr.msra.gmra.mrb[68].mxu0 %vm44_vm0, %v3096_v47  ;;  %4697 = vmatmul.mubr.bf16.vlgmr.msra.gmra.mrb[60].mxu1 %v5112_v36 }
 0xd3e   :  { %4701 = vmatpush3.bf16.msra.mxu0 %v4866_v18  ;;  %4702 = vmatprep.mubr.msk.bf16.mxu0 %vm5111_vm2, %v5110_v20 }
 0xd3f   :  { %4707 = vmatpush3.bf16.msra.mxu1 %v5775_v19  ;;  %4708 = vmatprep.mubr.msk.bf16.mxu1 %vm5111_vm2, %v5110_v20 }
 0xd40   :  { %4712 = vmatprep.subr.bf16.mxu0 %v5110_v20  ;;  %4718 = vmatprep.subr.bf16.mxu1 %v5110_v20 }
 0xd45   :  { %4703 = vmatmul.mubr.bf16.vlgmr.msra.gmra.mrb[72].mxu0 %v5112_v36  ;;  %4709 = vmatmul.mubr.bf16.vlgmr.msra.gmra.mrb[64].mxu1 %v5112_v36  ;;  %v4114_v36 = vld [vmem:[%s5991_s3 + $0x1b8] sm:$0xff] }
 0xd46   :  { %4713 = vmatpush3.bf16.msra.mxu0 %v4865_v28  ;;  %4719 = vmatpush3.bf16.msra.mxu1 %v4866_v18  ;;  %v2574_v54 = vadd.f32 %v5659_v17, %v4114_v36  ;;  %v5819_v17 = vld [vmem:[%s5991_s3 + $0x2c0] sm:$0xff] }
 0xd47   :  { %4714 = vmatprep.mubr.msk.bf16.mxu0 %vm5111_vm2, %v5110_v20  ;;  %4720 = vmatprep.mubr.msk.bf16.mxu1 %vm5111_vm2, %v5110_v20 }
 0xd48   :  { %4724 = vmatprep.subr.bf16.mxu0 %v5110_v20 }
 0xe08   :  { %v3134_v15 = vpop.f32.mrb[64].mxu0  ;;  %v3175_v16 = vpop.f32.mrb[56].mxu1 }
 0xe09   :  { %v3135_v44 = vadd.f32 %v5704_v49, %v3134_v15  ;;  %v3176_v51 = vadd.f32 %v5709_v50, %v3175_v16  ;;  %v4680_v52 = vpop.f32.mrb[65].mxu0  ;;  %v4686_v53 = vpop.f32.mrb[57].mxu1  ;;  %v4140_v50 = vld [vmem:[%s5991_s3 + $0x210] sm:$0xff]  ;;  %v4150_v15 = vld [vmem:[%s5991_s3 + $0x238] sm:$0xff] }
 0xe0a   :  { %v3137_v57 = vpop.f32.mrb[66].mxu0  ;;  %v3178_v58 = vpop.f32.mrb[58].mxu1  ;;  %v2760_v9 = vadd.f32 %v5665_v26, %v4140_v50  ;;  %v4149_v26 = vld [vmem:[%s5991_s3 + $0x230] sm:$0xff] }
 0xe0b   :  { %v3223_v59 = vadd.f32 %v3135_v44, %v2571_v23  ;;  %v3237_v60 = vadd.f32 %v3176_v51, %v2634_v24  ;;  %v3138_v61 = vadd.f32 %v5720_v41, %v3137_v57  ;;  %v3179_v13 = vadd.f32 %v5725_v42, %v3178_v58  ;;  %v4681_v62 = vpop.f32.mrb[67].mxu0  ;;  %v4687_v14 = vpop.f32.mrb[59].mxu1  ;;  %v4141_v41 = vld [vmem:[%s5991_s3 + $0x218] sm:$0xff]  ;;  %v5847_v23 = vld [vmem:[%s5991_s3 + $0x2e8] sm:$0xff] }
 0xe0c   :  { %v2763_v7 = vadd.f32 %v5673_v27, %v4141_v41  ;;  %v2823_v51 = vadd.f32 %v5679_v30, %v4149_v26 }
 0xe0d   :  { %v4185_v63 = vmul.f32 -1.442695, %v3223_v59  ;;  %v3224_v49 = vadd.f32 %v3138_v61, %v2574_v54  ;;  %v3238_v0 = vadd.f32 %v3179_v13, %v2637_v56  ;;  %v4187_v5 = vmul.f32 -1.442695, %v3237_v60 }
 0xe0e   :  { %v2826_v60 = vadd.f32 %v5687_v37, %v4150_v15  ;;  %v4131_v37 = vld [vmem:[%s5991_s3 + $0x1f0] sm:$0xff] }
 0xe0f   :  { %5002 = vpow2.f32 %v4185_v63  ;;  %v4186_v22 = vmul.f32 -1.442695, %v3224_v49  ;;  %v4188_v33 = vmul.f32 -1.442695, %v3238_v0 }
 0xe10   :  { %v3216_v42 = vpop.f32.mrb[68].mxu0  ;;  %v3311_v1 = vpop.f32.mrb[60].mxu1 }
 0xe11   :  { %5004 = vpow2.f32 %v4186_v22  ;;  %v3312_v48 = vadd.f32 %v5819_v17, %v3311_v1  ;;  %v4692_v6 = vpop.f32.mrb[69].mxu0  ;;  %v4698_v45 = vpop.f32.mrb[61].mxu1 }
 0xe12   :  { %v3219_v34 = vpop.f32.mrb[70].mxu0  ;;  %v3314_v10 = vpop.f32.mrb[62].mxu1  ;;  %5006 = vpow2.f32 %v4187_v5  ;;  %v3217_v5 = vadd.f32 %v5734_v43, %v3216_v42 }
 0xe13   :  { %v3424_v11 = vadd.f32 %v3312_v48, %v2760_v9  ;;  %v3315_v28 = vadd.f32 %v5827_v2, %v3314_v10  ;;  %v4693_v47 = vpop.f32.mrb[71].mxu0  ;;  %v4699_v18 = vpop.f32.mrb[63].mxu1 }
 0xe14   :  { %v3220_v47 = vadd.f32 %v5743_v4, %v3219_v34  ;;  %v4158_v4 = vld [vmem:[%s5991_s3 + $0x250] sm:$0xff]  ;;  %v5875_v34 = vld [vmem:[%s5991_s3 + $0x308] sm:$0xff] }
 0xe15   :  { %v4204_v21 = vmul.f32 -1.442695, %v3424_v11  ;;  %v3425_v36 = vadd.f32 %v3315_v28, %v2763_v7  ;;  %v4132_v7 = vld [vmem:[%s5991_s3 + $0x1f8] sm:$0xff]  ;;  %v2697_v11 = vadd.f32 %v5663_v25, %v4131_v37 }
 0xe16   :  { %v2700_v43 = vadd.f32 %v5671_v12, %v4132_v7 }
 0xe17   :  { %5008 = vpow2.f32 %v4204_v21  ;;  %v4205_v27 = vmul.f32 -1.442695, %v3425_v36 }
 0xe18   :  { %5010 = vpow2.f32 %v4188_v33  ;;  %v3364_v16 = vpop.f32.mrb[72].mxu0  ;;  %v3417_v24 = vpop.f32.mrb[64].mxu1  ;;  %v5865_v33 = vld [vmem:[%s5991_s3 + $0x300] sm:$0xff] }
 0xe19   :  { %v5003_v44 = vpop.eup %5002  ;;  %5012 = vpow2.f32 %v4205_v27  ;;  %v3365_v52 = vadd.f32 %v5839_v55, %v3364_v16  ;;  %v4704_v53 = vpop.f32.mrb[73].mxu0  ;;  %v3418_v15 = vadd.f32 %v5865_v33, %v3417_v24 }
 0xe1a   :  { %v4710_v54 = vpop.f32.mrb[65].mxu1  ;;  %v3231_v56 = vadd.f32 1.0, %v5003_v44  ;;  %v3367_v57 = vpop.f32.mrb[74].mxu0  ;;  %v4159_v44 = vld [vmem:[%s5991_s3 + $0x258] sm:$0xff] }
 0xe1b   :  { %v3420_v58 = vpop.f32.mrb[66].mxu1  ;;  %v5005_v59 = vpop.eup %5004  ;;  %v3438_v61 = vadd.f32 %v3365_v52, %v2823_v51  ;;  %v3368_v13 = vadd.f32 %v5847_v23, %v3367_v57  ;;  %v2886_v51 = vadd.f32 %v5681_v31, %v4158_v4  ;;  %v4138_v4 = vld [vmem:[%s5991_s3 + $0x200] sm:$0xff] }
 0xe1c   :  { %v4705_v62 = vpop.f32.mrb[75].mxu0  ;;  %v4711_v14 = vpop.f32.mrb[67].mxu1  ;;  %5014 = vrcp.f32 %v3231_v56  ;;  %v3232_v63 = vadd.f32 1.0, %v5005_v59  ;;  %v3421_v52 = vadd.f32 %v5875_v34, %v3420_v58  ;;  %v2889_v56 = vadd.f32 %v5689_v38, %v4159_v44  ;;  %v4148_v44 = vld [vmem:[%s5991_s3 + $0x228] sm:$0xff] }
 0xe1d   :  { %v4206_v49 = vmul.f32 -1.442695, %v3438_v61  ;;  %v3439_v30 = vadd.f32 %v3368_v13, %v2826_v60  ;;  %v5007_v50 = vpop.eup %5006 }
 0xe1e   :  { %5016 = vrcp.f32 %v3232_v63  ;;  %v3245_v48 = vadd.f32 1.0, %v5007_v50 }
 0xe1f   :  { %v4207_v0 = vmul.f32 -1.442695, %v3439_v30  ;;  %5018 = vpow2.f32 %v4206_v49 }
 0xe21   :  { %v5009_v22 = vpop.eup %5008  ;;  %5020 = vpow2.f32 %v4207_v0 }
 0xe22   :  { %v5011_v41 = vpop.eup %5010  ;;  %v3432_v1 = vadd.f32 1.0, %v5009_v22 }
 0xe23   :  { %v5013_v9 = vpop.eup %5012  ;;  %v3246_v45 = vadd.f32 1.0, %v5011_v41 }
 0xe24   :  { %5022 = vrcp.f32 %v3432_v1  ;;  %v3433_v6 = vadd.f32 1.0, %v5013_v9 }
 0xe26   :  { %v5015_v10 = vpop.eup %5014  ;;  %5024 = vrcp.f32 %v3433_v6 }
 0xe27   :  { %5026 = vrcp.f32 %v3245_v48  ;;  %v3251_v28 = vmul.f32 %v5015_v10, %v3217_v5 }
 0xe28   :  { %v5017_v18 = vpop.eup %5016  ;;  %5028 = vrcp.f32 %v3246_v45 }
 0xe29   :  { %v3253_v42 = vadd.f32 %v3251_v28, %v2697_v11  ;;  %v3252_v21 = vmul.f32 %v5017_v18, %v3220_v47  ;;  %v5019_v36 = vpop.eup %5018 }
 0xe2a   :  { %v3446_v25 = vadd.f32 1.0, %v5019_v36 }
 0xe2b   :  { %v5021_v26 = vpop.eup %5020  ;;  %5030 = vtanh.f32 %v3253_v42  ;;  %v3254_v27 = vadd.f32 %v3252_v21, %v2700_v43 }
 0xe2c   :  { %v3447_v12 = vadd.f32 1.0, %v5021_v26 }
 0xe2d   :  { %5032 = vtanh.f32 %v3254_v27 }
 0xe2e   :  { %v5023_v16 = vpop.eup %5022  ;;  %5034 = vrcp.f32 %v3446_v25 }
 0xe2f   :  { %v3452_v24 = vmul.f32 %v5023_v16, %v3418_v15  ;;  %5036 = vrcp.f32 %v3447_v12  ;;  %v4147_v12 = vld [vmem:[%s5991_s3 + $0x220] sm:$0xff]  ;;  %v4139_v16 = vld [vmem:[%s5991_s3 + $0x208] sm:$0xff] }
 0xe30   :  { %v5025_v53 = vpop.eup %5024 }
 0xe31   :  { %v5027_v54 = vpop.eup %5026  ;;  %v3454_v57 = vadd.f32 %v3452_v24, %v2886_v51  ;;  %v3453_v59 = vmul.f32 %v5025_v53, %v3421_v52  ;;  %v2752_v52 = vadd.f32 %v4138_v4, %v5669_v35  ;;  %v2815_v53 = vadd.f32 %v4147_v12, %v5683_v3 }
 0xe32   :  { %v5029_v60 = vpop.eup %5028  ;;  %v3257_v13 = vsub.f32 1.0, %v5027_v54  ;;  %v3261_v14 = vmul.f32 %v5027_v54, %v5751_v46  ;;  %v4215_v4 = vmul.f32 -1.442695, %v5751_v46  ;;  %v4216_v12 = vmul.f32 -1.442695, %v5753_v8 }
 0xe33   :  { %5038 = vtanh.f32 %v3454_v57  ;;  %v3455_v61 = vadd.f32 %v3453_v59, %v2889_v56  ;;  %v3258_v31 = vsub.f32 1.0, %v5029_v60  ;;  %v3262_v58 = vmul.f32 %v5029_v60, %v5753_v8 }
 0xe34   :  { %v2755_v60 = vadd.f32 %v4139_v16, %v5677_v29 }
 0xe35   :  { %v5031_v62 = vpop.eup %5030  ;;  %5040 = vtanh.f32 %v3455_v61  ;;  %v2818_v61 = vadd.f32 %v4148_v44, %v5691_v39 }
 0xe36   :  { %v3259_v63 = vmul.f32 %v5031_v62, %v3257_v13 }
 0xe37   :  { %v5033_v49 = vpop.eup %5032 }
 0xe38   :  { %v3260_v30 = vmul.f32 %v5033_v49, %v3258_v31  ;;  %v3263_v0 = vadd.f32 %v3261_v14, %v3259_v63  ;;  %v5035_v50 = vpop.eup %5034 }
 0xe39   :  { %v5037_v41 = vpop.eup %5036  ;;  %v3458_v1 = vsub.f32 1.0, %v5035_v50  ;;  %v3462_v37 = vmul.f32 0.0, %v5035_v50 }
 0xe3a   :  { %v3264_v38 = vadd.f32 %v3262_v58, %v3260_v30  ;;  %v4217_v22 = vmul.f32 -1.442695, %v3263_v0  ;;  %v3459_v6 = vsub.f32 1.0, %v5037_v41  ;;  %v3463_v10 = vmul.f32 0.0, %v5037_v41 }
 0xe3c   :  { %5042 = vpow2.f32 %v4217_v22  ;;  %v4218_v9 = vmul.f32 -1.442695, %v3264_v38 }
 0xe3d   :  { %v5039_v48 = vpop.eup %5038 }
 0xe3e   :  { %v3460_v45 = vmul.f32 %v5039_v48, %v3458_v1  ;;  %5044 = vpow2.f32 %v4218_v9 }
 0xe3f   :  { %v5041_v5 = vpop.eup %5040 }
 0xe40   :  { %v5885_v7 = vadd.f32 %v3462_v37, %v3460_v45  ;;  %v3461_v11 = vmul.f32 %v5041_v5, %v3459_v6  ;;  %v4156_v6 = vld [vmem:[%s5991_s3 + $0x240] sm:$0xff] }
 0xe42   :  { %v5887_v28 = vadd.f32 %v3463_v10, %v3461_v11  ;;  %v4157_v11 = vld [vmem:[%s5991_s3 + $0x248] sm:$0xff] }
 0xe44   :  { %v3466_v47 = vpack.c.bf16 %v5887_v28, %v5885_v7 }
 0xe46   :  { %v5043_v18 = vpop.eup %5042  ;;  %4715 = vmatmul.mubr.msk.bf16.vlgmr.msra.gmra.mrb[76].mxu0 %vm44_vm0, %v3466_v47  ;;  %4721 = vmatmul.mubr.msk.bf16.vlgmr.msra.gmra.mrb[68].mxu1 %vm44_vm0, %v3466_v47 }
 0xe47   :  { %4725 = vmatpush3.bf16.msra.mxu0 %v5775_v19  ;;  %4726 = vmatprep.mubr.msk.bf16.mxu0 %vm5111_vm2, %v5110_v20  ;;  %v3649_v43 = vadd.f32 1.0, %v5043_v18  ;;  %v4868_v20 = vld [vmem:[%s5988_s1 + $0x150] sm:$0xff]   ;;  %v5909_v19 = vld [vmem:[%s5988_s1 + $0x148] sm:$0xff]  }
 0xe48   :  { %v5045_v42 = vpop.eup %5044  ;;  %4730 = vmatprep.subr.bf16.mxu1 %v4868_v20 }
 0xe49   :  { %v3650_v21 = vadd.f32 1.0, %v5045_v42  ;;  %5046 = vrcp.f32 %v3649_v43  ;;  %4731 = vmatpush3.bf16.msra.mxu1 %v4868_v20 }
 0xe4a   :  { %4736 = vmatprep.subr.bf16.mxu1 %v5909_v19 }
 0xe4b   :  { %5048 = vrcp.f32 %v3650_v21  ;;  %v2881_v21 = vadd.f32 %v4157_v11, %v5693_v40 }
 0xe4e   :  { %4727 = vmatmul.mubr.msk.bf16.vlgmr.msra.gmra.mrb[80].mxu0 %vm44_vm0, %v3466_v47  ;;  %v2878_v47 = vadd.f32 %v4156_v6, %v5685_v32  ;;  %v4222_v32 = vmul.f32 -1.442695, %v5887_v28 }
 0xe53   :  { %v5047_v36 = vpop.eup %5046 }
 0xe54   :  { %v5897_v27 = vmul.f32 %v5047_v36, %v3263_v0 }
 0xe55   :  { %v5049_v26 = vpop.eup %5048 }
 0xe56   :  { %v5899_v25 = vmul.f32 %v5049_v26, %v3264_v38 }
 0xe58   :  { %v3664_v15 = vpack.c.bf16 %v5899_v25, %v5897_v27  ;;  %v4234_v27 = vld [vmem:[%s5991_s3 + $0x328] sm:$0xff] }
 0xf19   :  { %v3504_v51 = vpop.f32.mrb[76].mxu0  ;;  %v3545_v24 = vpop.f32.mrb[68].mxu1 }
 0xf1a   :  { %v3505_v54 = vadd.f32 %v5819_v17, %v3504_v51  ;;  %v3546_v56 = vadd.f32 %v5839_v55, %v3545_v24  ;;  %v4716_v57 = vpop.f32.mrb[77].mxu0  ;;  %v4722_v59 = vpop.f32.mrb[69].mxu1 }
 0xf1b   :  { %v3507_v13 = vpop.f32.mrb[78].mxu0  ;;  %v3548_v62 = vpop.f32.mrb[70].mxu1 }
 0xf1c   :  { %v3593_v14 = vadd.f32 %v3505_v54, %v2752_v52  ;;  %v3607_v31 = vadd.f32 %v3546_v56, %v2815_v53  ;;  %v3508_v63 = vadd.f32 %v5827_v2, %v3507_v13  ;;  %v3549_v35 = vadd.f32 %v5847_v23, %v3548_v62  ;;  %v4717_v49 = vpop.f32.mrb[79].mxu0  ;;  %v4723_v3 = vpop.f32.mrb[71].mxu1 }
 0xf1e   :  { %v4211_v58 = vmul.f32 -1.442695, %v3593_v14  ;;  %v3594_v17 = vadd.f32 %v3508_v63, %v2755_v60  ;;  %v3608_v30 = vadd.f32 %v3549_v35, %v2818_v61  ;;  %v4213_v50 = vmul.f32 -1.442695, %v3607_v31 }
 0xf20   :  { %5050 = vpow2.f32 %v4211_v58  ;;  %v4212_v55 = vmul.f32 -1.442695, %v3594_v17  ;;  %v4214_v22 = vmul.f32 -1.442695, %v3608_v30 }
 0xf21   :  { %v3586_v0 = vpop.f32.mrb[80].mxu0 }
 0xf22   :  { %5052 = vpow2.f32 %v4212_v55  ;;  %v4728_v29 = vpop.f32.mrb[81].mxu0  ;;  %v3587_v5 = vadd.f32 %v5865_v33, %v3586_v0 }
 0xf23   :  { %v3589_v39 = vpop.f32.mrb[82].mxu0  ;;  %5054 = vpow2.f32 %v4213_v50 }
 0xf24   :  { %v4729_v38 = vpop.f32.mrb[83].mxu0  ;;  %5056 = vpow2.f32 %v4214_v22  ;;  %v3590_v43 = vadd.f32 %v5875_v34, %v3589_v39  ;;  %v4221_v34 = vmul.f32 -1.442695, %v5885_v7 }
 0xf2a   :  { %v5051_v41 = vpop.eup %5050 }
 0xf2b   :  { %v3601_v2 = vadd.f32 1.0, %v5051_v41 }
 0xf2c   :  { %v5053_v1 = vpop.eup %5052 }
 0xf2d   :  { %5058 = vrcp.f32 %v3601_v2  ;;  %v3602_v23 = vadd.f32 1.0, %v5053_v1  ;;  %v5055_v9 = vpop.eup %5054 }
 0xf2e   :  { %v5057_v48 = vpop.eup %5056  ;;  %v3615_v37 = vadd.f32 1.0, %v5055_v9 }
 0xf2f   :  { %5060 = vrcp.f32 %v3602_v23  ;;  %v3616_v45 = vadd.f32 1.0, %v5057_v48 }
 0xf30   :  { %5062 = vrcp.f32 %v3615_v37 }
 0xf31   :  { %5064 = vrcp.f32 %v3616_v45 }
 0xf37   :  { %v5059_v10 = vpop.eup %5058 }
 0xf38   :  { %v3621_v18 = vmul.f32 %v5059_v10, %v3587_v5 }
 0xf39   :  { %v5061_v42 = vpop.eup %5060 }
 0xf3a   :  { %v3623_v36 = vadd.f32 %v3621_v18, %v2878_v47  ;;  %v3622_v26 = vmul.f32 %v5061_v42, %v3590_v43  ;;  %v5063_v33 = vpop.eup %5062 }
 0xf3b   :  { %v5065_v16 = vpop.eup %5064  ;;  %v3627_v44 = vsub.f32 1.0, %v5063_v33  ;;  %v3631_v52 = vmul.f32 %v5063_v33, %v5885_v7 }
 0xf3c   :  { %5066 = vtanh.f32 %v3623_v36  ;;  %v3624_v20 = vadd.f32 %v3622_v26, %v2881_v21  ;;  %v3628_v40 = vsub.f32 1.0, %v5065_v16  ;;  %v3632_v56 = vmul.f32 %v5065_v16, %v5887_v28 }
 0xf3e   :  { %5068 = vtanh.f32 %v3624_v20 }
 0xf3f   :  { %5070 = vpow2.f32 %v4215_v4 }
 0xf40   :  { %5072 = vpow2.f32 %v4216_v12 }
 0xf41   :  { %5074 = vpow2.f32 %v4222_v32 }
 0xf42   :  { %5076 = vpow2.f32 %v4221_v34 }
 0xf46   :  { %v5067_v51 = vpop.eup %5066 }
 0xf47   :  { %v3629_v24 = vmul.f32 %v5067_v51, %v3627_v44 }
 0xf48   :  { %v5069_v53 = vpop.eup %5068 }
 0xf49   :  { %v3630_v54 = vmul.f32 %v5069_v53, %v3628_v40  ;;  %v3633_v57 = vadd.f32 %v3631_v52, %v3629_v24  ;;  %v5071_v13 = vpop.eup %5070 }
 0xf4a   :  { %v5073_v62 = vpop.eup %5072  ;;  %v3647_v31 = vadd.f32 1.0, %v5071_v13 }
 0xf4b   :  { %v3634_v59 = vadd.f32 %v3632_v56, %v3630_v54  ;;  %v4219_v60 = vmul.f32 -1.442695, %v3633_v57  ;;  %v5075_v14 = vpop.eup %5074  ;;  %v3648_v35 = vadd.f32 1.0, %v5073_v62 }
 0xf4c   :  { %v5077_v63 = vpop.eup %5076  ;;  %v3680_v49 = vadd.f32 1.0, %v5075_v14 }
 0xf4d   :  { %5078 = vpow2.f32 %v4219_v60  ;;  %v4220_v61 = vmul.f32 -1.442695, %v3634_v59  ;;  %v3679_v58 = vadd.f32 1.0, %v5077_v63 }
 0xf4f   :  { %5080 = vpow2.f32 %v4220_v61 }
 0xf50   :  { %5082 = vrcp.f32 %v3647_v31 }
 0xf51   :  { %5084 = vrcp.f32 %v3648_v35 }
 0xf52   :  { %5086 = vrcp.f32 %v3680_v49 }
 0xf57   :  { %v5079_v3 = vpop.eup %5078 }
 0xf58   :  { %v3677_v17 = vadd.f32 1.0, %v5079_v3 }
 0xf59   :  { %v5081_v30 = vpop.eup %5080 }
 0xf5a   :  { %v3678_v55 = vadd.f32 1.0, %v5081_v30  ;;  %5088 = vrcp.f32 %v3677_v17  ;;  %v5083_v0 = vpop.eup %5082 }
 0xf5b   :  { %5090 = vrcp.f32 %v3679_v58  ;;  %v5085_v29 = vpop.eup %5084  ;;  %v3659_v37 = vmul.f32 %v5083_v0, %v5751_v46  ;;  %v4233_v46 = vld [vmem:[%s5991_s3 + $0x320] sm:$0xff] }
 0xf5c   :  { %5092 = vrcp.f32 %v3678_v55  ;;  %v5087_v50 = vpop.eup %5086  ;;  %v3660_v23 = vmul.f32 %v5085_v29, %v5753_v8  ;;  %v4235_v8 = vld [vmem:[%s5991_s3 + $0x330] sm:$0xff] }
 0xf5d   :  { %v3692_v41 = vmul.f32 %v5087_v50, %v5887_v28  ;;  %v4236_v28 = vld [vmem:[%s5991_s3 + $0x338] sm:$0xff] }
 0xf5e   :  { %v3663_v45 = vpack.c.bf16 %v3660_v23, %v3659_v37 }
 0xf64   :  { %v5089_v39 = vpop.eup %5088 }
 0xf65   :  { %v5091_v38 = vpop.eup %5090  ;;  %v3689_v2 = vmul.f32 %v5089_v39, %v3633_v57 }
 0xf66   :  { %v5093_v22 = vpop.eup %5092  ;;  %v3691_v9 = vmul.f32 %v5091_v38, %v5885_v7 }
 0xf67   :  { %v3690_v1 = vmul.f32 %v5093_v22, %v3634_v59 }
 0xf68   :  { %v3694_v6 = vpack.c.bf16 %v3692_v41, %v3691_v9 }
 0xf69   :  { %v3693_v48 = vpack.c.bf16 %v3690_v1, %v3689_v2 }
 0xf6b   :  { %4732 = vmatprep.mubr.msk.bf16.mxu1 %vm44_vm0, %v3693_v48 }
 0xf6c   :  { %4733 = vmatmul.mubr.msk.bf16.vlgmr.msra.gmra.mrb[72].mxu1 %vm44_vm0, %v3694_v6 }
 0xf6d   :  { %4737 = vmatpush3.bf16.msra.mxu1 %v5909_v19  ;;  %4738 = vmatprep.mubr.msk.bf16.mxu1 %vm44_vm0, %v3663_v45 }
 0xf78   :  { %4739 = vmatmul.mubr.msk.bf16.vlgmr.msra.gmra.mrb[72].mxu1 %vm44_vm0, %v3664_v15 }
0x104b   :  { %v4740_v7 = vpop.f32.mrb[72].mxu1 }
0x104c   :  { %v3830_v19 = vadd.f32 %v4740_v7, %v4235_v8  ;;  %v3808_v5 = vpop.f32.mrb[73].mxu1 }
0x104d   :  { %v3828_v25 = vadd.f32 %v4233_v46, %v3808_v5  ;;  %v4741_v15 = vpop.f32.mrb[74].mxu1 }
0x104e   :  { %v4239_v10 = vmul.f32 -1.442695, %v3830_v19  ;;  %v3831_v11 = vadd.f32 %v4741_v15, %v4236_v28  ;;  %v3811_v47 = vpop.f32.mrb[75].mxu1 }
0x104f   :  { %v4237_v18 = vmul.f32 -1.442695, %v3828_v25  ;;  %v3829_v43 = vadd.f32 %v4234_v27, %v3811_v47 }
0x1050   :  { %5094 = vpow2.f32 %v4239_v10  ;;  %v4240_v42 = vmul.f32 -1.442695, %v3831_v11 }
0x1051   :  { %5096 = vpow2.f32 %v4237_v18  ;;  %v4238_v21 = vmul.f32 -1.442695, %v3829_v43 }
0x1052   :  { %5098 = vpow2.f32 %v4240_v42 }
0x1053   :  { %5100 = vpow2.f32 %v4238_v21 }
0x105a   :  { %v5095_v36 = vpop.eup %5094 }
0x105b   :  { %v5097_v26 = vpop.eup %5096  ;;  %v3846_v20 = vadd.f32 1.0, %v5095_v36 }
0x105c   :  { %v5099_v33 = vpop.eup %5098  ;;  %v3844_v4 = vadd.f32 1.0, %v5097_v26 }
0x105d   :  { %v5101_v12 = vpop.eup %5100  ;;  %5102 = vrcp.f32 %v3846_v20  ;;  %v3847_v16 = vadd.f32 1.0, %v5099_v33 }
0x105e   :  { %5104 = vrcp.f32 %v3844_v4  ;;  %v3845_v32 = vadd.f32 1.0, %v5101_v12 }
0x105f   :  { %5106 = vrcp.f32 %v3847_v16 }
0x1060   :  { %5108 = vrcp.f32 %v3845_v32 }
0x1067   :  { %v5103_v44 = vpop.eup %5102 }
0x1068   :  { %v5105_v51 = vpop.eup %5104  ;;  %3858 = vst.msk [vmem:[%s5992_s4 + $0x10] sm:$0xff] %vm44_vm0, %v5103_v44 }
0x1069   :  { %v5107_v34 = vpop.eup %5106  ;;  %3856 = vst.msk [vmem:[%s5992_s4] sm:$0xff] %vm44_vm0, %v5105_v51 }
0x106a   :  { %v5109_v40 = vpop.eup %5108  ;;  %3859 = vst.msk [vmem:[%s5992_s4 + $0x18] sm:$0xff] %vm44_vm0, %v5107_v34 }
0x106b   :  { %3857 = vst.msk [vmem:[%s5992_s4 + $0x8] sm:$0xff] %vm44_vm0, %v5109_v40 }

</bundles_post_ra>
